<compile_context>
chip_gen: v7x
topology: tpu7x:2x2x1
jax: 0.10.0
libtpu: 0.0.40
codegen_flags: <defaults>
</compile_context>

<pallas_src>
import jax
import jax.numpy as jnp
from jax import lax
from jax.experimental import pallas as pl
from jax.experimental.pallas import tpu as pltpu


def _round_up(x, m):
    return (x + m - 1) // m * m


def _const_spec(shape):
    nd = len(shape)
    return pl.BlockSpec(shape, lambda i, _nd=nd: (0,) * _nd)


# ---------------------------------------------------------------------------
# Fused kernel factory
# ---------------------------------------------------------------------------
def _make_fused_kernel(tn, l, v, filters, f_total, n_highway):
    n_groups = len(filters)

    def kernel(*refs):
        i = 0
        chars_ref = refs[i]; i += 1                     # (TN, L) int32
        word_ref = refs[i]; i += 1                      # (TN, Dw) f32
        tab_ref = refs[i]; i += 1                       # (V, C)  char-emb table
        conv_w_refs = refs[i:i + n_groups]; i += n_groups   # (width, C, num) each
        conv_b_ref = refs[i]; i += 1                    # (1, F)
        hw_refs = []
        for _ in range(n_highway):
            hw_refs.append((refs[i], refs[i + 1]))      # (F, 2F), (1, 2F)
            i += 2
        wp_word_ref = refs[i]; i += 1                   # (Dw, Ppad)
        wp_char_ref = refs[i]; i += 1                   # (F, Ppad)
        bp_ref = refs[i]; i += 1                        # (1, Ppad)
        o_ref = refs[i]                                 # (TN, Ppad)

        # ---- fused char-embedding gather: one-hot @ table on the MXU --------
        ids = chars_ref[...]
        v_iota = lax.broadcasted_iota(jnp.int32, (tn, l, v), 2)
        onehot = jnp.where(ids[:, :, None] == v_iota, 1.0, 0.0)   # (TN, L, V) f32
        emb = jnp.dot(onehot.reshape(tn * l, v), tab_ref[...],
                      preferred_element_type=jnp.float32)          # (TN*L, C)

        # ---- conv1d (VALID) + max over positions + relu, per filter group ---
        conv_outs = []
        for g in range(n_groups):
            width, num = filters[g]
            l_out = l - width + 1
            w_ref = conv_w_refs[g]
            conv3 = None
            for k in range(width):                      # `width` big matmuls
                yk = jnp.dot(emb, w_ref[k],
                             preferred_element_type=jnp.float32)   # (TN*L, num)
                yk = yk.reshape(tn, l, num)[:, k:k + l_out, :]     # shifted view
                conv3 = yk if conv3 is None else conv3 + yk
            conv_outs.append(jnp.max(conv3, axis=1))               # (TN, num)

        # bias is position-invariant: relu(max(conv) + b) == relu(max(conv + b))
        feat = jnp.concatenate(conv_outs, axis=-1) + conv_b_ref[...]
        feat = jnp.maximum(feat, 0.0)                               # (TN, F)

        # ---- Highway: one (F, 2F) matmul per layer (128-lane wide output) ---
        for w_ref, b_ref in hw_refs:
            proj = jnp.dot(feat, w_ref[...],
                           preferred_element_type=jnp.float32) + b_ref[...]
            nonlin = jnp.maximum(proj[:, :f_total], 0.0)
            gate = jax.nn.sigmoid(proj[:, f_total:])
            feat = gate * feat + (1.0 - gate) * nonlin

        # ---- projection split into word/char halves (no in-kernel concat),
        #      output padded to 128 lanes -> lane-dense store -----------------
        o_ref[...] = (jnp.dot(word_ref[...], wp_word_ref[...],
                              preferred_element_type=jnp.float32)
                      + jnp.dot(feat, wp_char_ref[...],
                                preferred_element_type=jnp.float32)
                      + bp_ref[...])

    return kernel


# ---------------------------------------------------------------------------
# Model config / parameters (PyTorch layouts) + one-time weight preprocessing
# ---------------------------------------------------------------------------
CFG = dict(
    word_vocab=100, char_vocab=60,
    word_dim=32, char_dim=16, max_chars=16,
    filters=[(1, 16), (2, 16), (3, 32)],   # -> n_filters = 64
    n_highway=1, projection_dim=64,
    activation="relu",
)


def init_params(key, cfg):
    n_filters = sum(f[1] for f in cfg["filters"])
    emb_dim = cfg["word_dim"] + n_filters
    keys = jax.random.split(key, 16)
    p = {}
    p["word_emb"] = 0.1 * jax.random.normal(keys[0], (cfg["word_vocab"], cfg["word_dim"]), jnp.float32)
    p["char_emb"] = 0.1 * jax.random.normal(keys[1], (cfg["char_vocab"], cfg["char_dim"]), jnp.float32)
    p["conv_w"], p["conv_b"] = [], []
    for i, (width, num) in enumerate(cfg["filters"]):
        p["conv_w"].append(0.1 * jax.random.normal(keys[2 + i], (num, cfg["char_dim"], width), jnp.float32))
        p["conv_b"].append(0.01 * jax.random.normal(keys[6 + i], (num,), jnp.float32))
    p["hw_w"], p["hw_b"] = [], []
    for i in range(cfg["n_highway"]):
        w = 0.1 * jax.random.normal(keys[10 + i], (2 * n_filters, n_filters), jnp.float32)
        # PyTorch Highway: bias[input_dim:] filled with 1
        b = jnp.concatenate([0.01 * jax.random.normal(keys[12 + i], (n_filters,), jnp.float32),
                             jnp.ones((n_filters,), jnp.float32)])
        p["hw_w"].append(w)
        p["hw_b"].append(b)
    p["proj_w"] = 0.1 * jax.random.normal(keys[14], (cfg["projection_dim"], emb_dim), jnp.float32)
    p["proj_b"] = 0.01 * jax.random.normal(keys[15], (cfg["projection_dim"],), jnp.float32)
    return p, n_filters


def prepare_pallas_params(params, cfg):
    """One-time weight preprocessing: transposes, splits, lane padding."""
    filters = cfg["filters"]
    dw = cfg["word_dim"]
    f_total = sum(num for _, num in filters)
    p_dim = cfg["projection_dim"]
    p_pad = _round_up(max(p_dim, 128), 128)          # lane-dense output slab

    prep = {
        "word_emb": params["word_emb"],
        "char_table": params["char_emb"],                                    # (V, C)
        "conv_w": [jnp.transpose(w, (2, 1, 0)) for w in params["conv_w"]],   # (width, C, num)
        "conv_b": jnp.concatenate(params["conv_b"]).reshape(1, f_total),     # (1, F)
        "hw_w": [jnp.transpose(w) for w in params["hw_w"]],                  # (F, 2F)
        "hw_b": [b.reshape(1, 2 * f_total) for b in params["hw_b"]],         # (1, 2F)
    }
    wp = jnp.transpose(params["proj_w"])                                     # (Dw+F, P)
    pad = p_pad - p_dim
    prep["wp_word"] = jnp.pad(wp[:dw, :], ((0, 0), (0, pad)))                # (Dw, Ppad)
    prep["wp_char"] = jnp.pad(wp[dw:, :], ((0, 0), (0, pad)))                # (F, Ppad)
    prep["bp"] = jnp.pad(params["proj_b"], (0, pad)).reshape(1, p_pad)       # (1, Ppad)
    return prep


# ---------------------------------------------------------------------------
# Forward wrappers
# ---------------------------------------------------------------------------
def cnn_forward_pallas(prep, word_inp, chars_inp, cfg):
    b, s = word_inp.shape
    n = b * s
    l = cfg["max_chars"]
    v = cfg["char_vocab"]
    dw = cfg["word_dim"]
    filters = tuple(tuple(f) for f in cfg["filters"])
    f_total = sum(num for _, num in filters)
    n_highway = cfg["n_highway"]
    p_dim = cfg["projection_dim"]
    p_pad = prep["bp"].shape[1]

    # glue: word-embedding gather + flattening stays in plain JAX
    word_rows = jnp.take(prep["word_emb"], word_inp.reshape(n), axis=0)      # (N, Dw)
    chars_flat = chars_inp.reshape(n, l).astype(jnp.int32)                   # (N, L)

    # token tiling: up to 128 tokens per tile, sublane-aligned, zero-padded
    tn = min(128, _round_up(n, 8))
    n_pad = _round_up(n, tn)
    if n_pad != n:
        word_rows = jnp.pad(word_rows, ((0, n_pad - n), (0, 0)))
        chars_flat = jnp.pad(chars_flat, ((0, n_pad - n), (0, 0)))

    inputs = [chars_flat, word_rows, prep["char_table"]]
    in_specs = [pl.BlockSpec((tn, l), lambda i: (i, 0)),
                pl.BlockSpec((tn, dw), lambda i: (i, 0)),
                _const_spec(prep["char_table"].shape)]
    for w in prep["conv_w"]:
        inputs.append(w)
        in_specs.append(_const_spec(w.shape))
    inputs.append(prep["conv_b"])
    in_specs.append(_const_spec(prep["conv_b"].shape))
    for w, bias in zip(prep["hw_w"], prep["hw_b"]):
        inputs.append(w)
        in_specs.append(_const_spec(w.shape))
        inputs.append(bias)
        in_specs.append(_const_spec(bias.shape))
    for name in ("wp_word", "wp_char", "bp"):
        inputs.append(prep[name])
        in_specs.append(_const_spec(prep[name].shape))

    out = pl.pallas_call(
        _make_fused_kernel(tn, l, v, filters, f_total, n_highway),
        out_shape=jax.ShapeDtypeStruct((n_pad, p_pad), jnp.float32),
        grid=(n_pad // tn,),
        in_specs=in_specs,
        out_specs=pl.BlockSpec((tn, p_pad), lambda i: (i, 0)),
        compiler_params=pltpu.CompilerParams(
            dimension_semantics=("parallel",)),
    )(*inputs)

    return out[:n, :p_dim].reshape(b, s, p_dim)


def cnn_forward_ref(params, word_inp, chars_inp, n_filters):
    """Pure-JAX reference mirroring the PyTorch forward exactly."""
    b, s = word_inp.shape
    n = b * s
    word_emb = jnp.take(params["word_emb"], word_inp, axis=0)
    chars_flat = chars_inp.reshape(n, -1)
    char_emb = jnp.take(params["char_emb"], chars_flat, axis=0)              # (N, L, C)
    x_ncl = jnp.transpose(char_emb, (0, 2, 1))                               # (N, C, L)
    convs = []
    for w_oiw, bias in zip(params["conv_w"], params["conv_b"]):
        y = jax.lax.conv_general_dilated(x_ncl, w_oiw, (1,), "VALID",
                                         dimension_numbers=("NCH", "OIH", "NCH"))
        y = y + bias[None, :, None]
        y = jnp.max(y, axis=-1)
        convs.append(jax.nn.relu(y))
    cur = jnp.concatenate(convs, axis=-1)
    for w, bias in zip(params["hw_w"], params["hw_b"]):
        proj = cur @ w.T + bias
        f = cur.shape[1]
        nonlin = jax.nn.relu(proj[:, :f])
        gate = jax.nn.sigmoid(proj[:, f:])
        cur = gate * cur + (1.0 - gate) * nonlin
    char_feat = cur.reshape(b, s, n_filters)
    token_embedding = jnp.concatenate([word_emb, char_feat], axis=2)
    out = token_embedding.reshape(n, -1) @ params["proj_w"].T + params["proj_b"]
    return out.reshape(b, s, -1)


if __name__ == "__main__":
    key = jax.random.PRNGKey(0)
    k_p, k_w, k_c = jax.random.split(key, 3)
    params, n_filters = init_params(k_p, CFG)
    prep = prepare_pallas_params(params, CFG)     # one-time weight preprocessing

    B, S, L = 2, 8, CFG["max_chars"]
    word_inp = jax.random.randint(k_w, (B, S), 0, CFG["word_vocab"], dtype=jnp.int32)
    chars_inp = jax.random.randint(k_c, (B, S, L), 0, CFG["char_vocab"], dtype=jnp.int32)

    fwd = jax.jit(lambda wi, ci: cnn_forward_pallas(prep, wi, ci, CFG))
    out = jax.block_until_ready(fwd(word_inp, chars_inp))

    ref = cnn_forward_ref(params, word_inp, chars_inp, n_filters)
    assert out.shape == (B, S, CFG["projection_dim"])
    assert jnp.allclose(out, ref, rtol=1e-4, atol=1e-4), "mismatch vs reference"

    print("KERNEL_OK")
</pallas_src>

<mosaic_0001>
module attributes {stable_mosaic.version = 11 : i64} {
  func.func @kernel(%arg0: i32, %arg1: memref<16x16xi32, #tpu.memory_space<vmem>>, %arg2: memref<16x32xf32, #tpu.memory_space<vmem>>, %arg3: memref<60x16xf32, #tpu.memory_space<vmem>>, %arg4: memref<1x16x16xf32, #tpu.memory_space<vmem>>, %arg5: memref<2x16x16xf32, #tpu.memory_space<vmem>>, %arg6: memref<3x16x32xf32, #tpu.memory_space<vmem>>, %arg7: memref<1x64xf32, #tpu.memory_space<vmem>>, %arg8: memref<64x128xf32, #tpu.memory_space<vmem>>, %arg9: memref<1x128xf32, #tpu.memory_space<vmem>>, %arg10: memref<32x128xf32, #tpu.memory_space<vmem>>, %arg11: memref<64x128xf32, #tpu.memory_space<vmem>>, %arg12: memref<1x128xf32, #tpu.memory_space<vmem>>, %arg13: memref<16x128xf32, #tpu.memory_space<vmem>>) attributes {dimension_semantics = [#tpu.dimension_semantics<parallel>], iteration_bounds = array<i64: 1>, scalar_prefetch = 0 : i64, scratch_operands = 0 : i64, tpu.core_type = #tpu.core_type<tc>, window_params = [{transform_indices = @transform_0, window_bounds = array<i64: 16, 16>}, {transform_indices = @transform_1, window_bounds = array<i64: 16, 32>}, {pipeline_mode = #tpu.pipeline_mode<synchronous>, transform_indices = @transform_2, window_bounds = array<i64: 60, 16>}, {pipeline_mode = #tpu.pipeline_mode<synchronous>, transform_indices = @transform_3, window_bounds = array<i64: 1, 16, 16>}, {pipeline_mode = #tpu.pipeline_mode<synchronous>, transform_indices = @transform_4, window_bounds = array<i64: 2, 16, 16>}, {pipeline_mode = #tpu.pipeline_mode<synchronous>, transform_indices = @transform_5, window_bounds = array<i64: 3, 16, 32>}, {pipeline_mode = #tpu.pipeline_mode<synchronous>, transform_indices = @transform_6, window_bounds = array<i64: 1, 64>}, {pipeline_mode = #tpu.pipeline_mode<synchronous>, transform_indices = @transform_7, window_bounds = array<i64: 64, 128>}, {pipeline_mode = #tpu.pipeline_mode<synchronous>, transform_indices = @transform_8, window_bounds = array<i64: 1, 128>}, {pipeline_mode = #tpu.pipeline_mode<synchronous>, transform_indices = @transform_9, window_bounds = array<i64: 32, 128>}, {pipeline_mode = #tpu.pipeline_mode<synchronous>, transform_indices = @transform_10, window_bounds = array<i64: 64, 128>}, {pipeline_mode = #tpu.pipeline_mode<synchronous>, transform_indices = @transform_11, window_bounds = array<i64: 1, 128>}, {transform_indices = @transform_12, window_bounds = array<i64: 16, 128>}]} {
    %c0 = arith.constant 0 : index
    %c0_0 = arith.constant 0 : index
    %0 = vector.load %arg1[%c0, %c0_0] : memref<16x16xi32, #tpu.memory_space<vmem>>, vector<16x16xi32>
    %1 = tpu.iota {dimensions = array<i32: 2>} : vector<16x16x60xi32>
    %2 = vector.shape_cast %0 : vector<16x16xi32> to vector<16x16x1xi32>
    %3 = vector.broadcast %2 : vector<16x16x1xi32> to vector<16x16x60xi32>
    %4 = arith.cmpi eq, %3, %1 : vector<16x16x60xi32>
    %cst = arith.constant 1.000000e+00 : f32
    %cst_1 = arith.constant 0.000000e+00 : f32
    %5 = vector.broadcast %cst : f32 to vector<16x16x60xf32>
    %6 = vector.broadcast %cst_1 : f32 to vector<16x16x60xf32>
    %7 = arith.select %4, %5, %6 : vector<16x16x60xi1>, vector<16x16x60xf32>
    %8 = vector.shape_cast %7 : vector<16x16x60xf32> to vector<256x60xf32>
    %c0_2 = arith.constant 0 : index
    %c0_3 = arith.constant 0 : index
    %9 = vector.load %arg3[%c0_2, %c0_3] : memref<60x16xf32, #tpu.memory_space<vmem>>, vector<60x16xf32>
    %cst_4 = arith.constant dense<0.000000e+00> : vector<256x16xf32>
    %10 = tpu.matmul %8, %9, %cst_4 {dimension_numbers = #tpu.dot_dimension_numbers<[1], [0], [0], [1], [0, 0, 1, 1], [], []>} : vector<256x60xf32>, vector<60x16xf32>, vector<256x16xf32> -> vector<256x16xf32>
    %c0_5 = arith.constant 0 : index
    %c0_6 = arith.constant 0 : index
    %c0_7 = arith.constant 0 : index
    %11 = vector.load %arg4[%c0_5, %c0_6, %c0_7] : memref<1x16x16xf32, #tpu.memory_space<vmem>>, vector<1x16x16xf32>
    %12 = vector.shape_cast %11 : vector<1x16x16xf32> to vector<16x16xf32>
    %cst_8 = arith.constant dense<0.000000e+00> : vector<256x16xf32>
    %13 = tpu.matmul %10, %12, %cst_8 {dimension_numbers = #tpu.dot_dimension_numbers<[1], [0], [0], [1], [0, 0, 1, 1], [], []>} : vector<256x16xf32>, vector<16x16xf32>, vector<256x16xf32> -> vector<256x16xf32>
    %14 = vector.shape_cast %13 : vector<256x16xf32> to vector<16x16x16xf32>
    %cst_9 = arith.constant dense<0xFF800000> : vector<16x16xf32>
    %15 = vector.multi_reduction <maximumf>, %14, %cst_9 [1] : vector<16x16x16xf32> to vector<16x16xf32>
    %c0_10 = arith.constant 0 : index
    %c0_11 = arith.constant 0 : index
    %c0_12 = arith.constant 0 : index
    %16 = vector.load %arg5[%c0_10, %c0_11, %c0_12] : memref<2x16x16xf32, #tpu.memory_space<vmem>>, vector<1x16x16xf32>
    %17 = vector.shape_cast %16 : vector<1x16x16xf32> to vector<16x16xf32>
    %cst_13 = arith.constant dense<0.000000e+00> : vector<256x16xf32>
    %18 = tpu.matmul %10, %17, %cst_13 {dimension_numbers = #tpu.dot_dimension_numbers<[1], [0], [0], [1], [0, 0, 1, 1], [], []>} : vector<256x16xf32>, vector<16x16xf32>, vector<256x16xf32> -> vector<256x16xf32>
    %19 = vector.shape_cast %18 : vector<256x16xf32> to vector<16x16x16xf32>
    %20 = vector.extract_strided_slice %19 {offsets = [0, 0, 0], sizes = [16, 15, 16], strides = [1, 1, 1]} : vector<16x16x16xf32> to vector<16x15x16xf32>
    %c1 = arith.constant 1 : index
    %c0_14 = arith.constant 0 : index
    %c0_15 = arith.constant 0 : index
    %21 = vector.load %arg5[%c1, %c0_14, %c0_15] : memref<2x16x16xf32, #tpu.memory_space<vmem>>, vector<1x16x16xf32>
    %22 = vector.shape_cast %21 : vector<1x16x16xf32> to vector<16x16xf32>
    %cst_16 = arith.constant dense<0.000000e+00> : vector<256x16xf32>
    %23 = tpu.matmul %10, %22, %cst_16 {dimension_numbers = #tpu.dot_dimension_numbers<[1], [0], [0], [1], [0, 0, 1, 1], [], []>} : vector<256x16xf32>, vector<16x16xf32>, vector<256x16xf32> -> vector<256x16xf32>
    %24 = vector.shape_cast %23 : vector<256x16xf32> to vector<16x16x16xf32>
    %25 = vector.extract_strided_slice %24 {offsets = [0, 1, 0], sizes = [16, 15, 16], strides = [1, 1, 1]} : vector<16x16x16xf32> to vector<16x15x16xf32>
    %26 = arith.addf %20, %25 : vector<16x15x16xf32>
    %cst_17 = arith.constant dense<0xFF800000> : vector<16x16xf32>
    %27 = vector.multi_reduction <maximumf>, %26, %cst_17 [1] : vector<16x15x16xf32> to vector<16x16xf32>
    %c0_18 = arith.constant 0 : index
    %c0_19 = arith.constant 0 : index
    %c0_20 = arith.constant 0 : index
    %28 = vector.load %arg6[%c0_18, %c0_19, %c0_20] : memref<3x16x32xf32, #tpu.memory_space<vmem>>, vector<1x16x32xf32>
    %29 = vector.shape_cast %28 : vector<1x16x32xf32> to vector<16x32xf32>
    %cst_21 = arith.constant dense<0.000000e+00> : vector<256x32xf32>
    %30 = tpu.matmul %10, %29, %cst_21 {dimension_numbers = #tpu.dot_dimension_numbers<[1], [0], [0], [1], [0, 0, 1, 1], [], []>} : vector<256x16xf32>, vector<16x32xf32>, vector<256x32xf32> -> vector<256x32xf32>
    %31 = vector.shape_cast %30 : vector<256x32xf32> to vector<16x16x32xf32>
    %32 = vector.extract_strided_slice %31 {offsets = [0, 0, 0], sizes = [16, 14, 32], strides = [1, 1, 1]} : vector<16x16x32xf32> to vector<16x14x32xf32>
    %c1_22 = arith.constant 1 : index
    %c0_23 = arith.constant 0 : index
    %c0_24 = arith.constant 0 : index
    %33 = vector.load %arg6[%c1_22, %c0_23, %c0_24] : memref<3x16x32xf32, #tpu.memory_space<vmem>>, vector<1x16x32xf32>
    %34 = vector.shape_cast %33 : vector<1x16x32xf32> to vector<16x32xf32>
    %cst_25 = arith.constant dense<0.000000e+00> : vector<256x32xf32>
    %35 = tpu.matmul %10, %34, %cst_25 {dimension_numbers = #tpu.dot_dimension_numbers<[1], [0], [0], [1], [0, 0, 1, 1], [], []>} : vector<256x16xf32>, vector<16x32xf32>, vector<256x32xf32> -> vector<256x32xf32>
    %36 = vector.shape_cast %35 : vector<256x32xf32> to vector<16x16x32xf32>
    %37 = vector.extract_strided_slice %36 {offsets = [0, 1, 0], sizes = [16, 14, 32], strides = [1, 1, 1]} : vector<16x16x32xf32> to vector<16x14x32xf32>
    %38 = arith.addf %32, %37 : vector<16x14x32xf32>
    %c2 = arith.constant 2 : index
    %c0_26 = arith.constant 0 : index
    %c0_27 = arith.constant 0 : index
    %39 = vector.load %arg6[%c2, %c0_26, %c0_27] : memref<3x16x32xf32, #tpu.memory_space<vmem>>, vector<1x16x32xf32>
    %40 = vector.shape_cast %39 : vector<1x16x32xf32> to vector<16x32xf32>
    %cst_28 = arith.constant dense<0.000000e+00> : vector<256x32xf32>
    %41 = tpu.matmul %10, %40, %cst_28 {dimension_numbers = #tpu.dot_dimension_numbers<[1], [0], [0], [1], [0, 0, 1, 1], [], []>} : vector<256x16xf32>, vector<16x32xf32>, vector<256x32xf32> -> vector<256x32xf32>
    %42 = vector.shape_cast %41 : vector<256x32xf32> to vector<16x16x32xf32>
    %43 = vector.extract_strided_slice %42 {offsets = [0, 2, 0], sizes = [16, 14, 32], strides = [1, 1, 1]} : vector<16x16x32xf32> to vector<16x14x32xf32>
    %44 = arith.addf %38, %43 : vector<16x14x32xf32>
    %cst_29 = arith.constant dense<0xFF800000> : vector<16x32xf32>
    %45 = vector.multi_reduction <maximumf>, %44, %cst_29 [1] : vector<16x14x32xf32> to vector<16x32xf32>
    %46 = tpu.concatenate %15, %27, %45 in 1 : vector<16x16xf32>, vector<16x16xf32>, vector<16x32xf32> -> vector<16x64xf32>
    %c0_30 = arith.constant 0 : index
    %c0_31 = arith.constant 0 : index
    %47 = vector.load %arg7[%c0_30, %c0_31] : memref<1x64xf32, #tpu.memory_space<vmem>>, vector<1x64xf32>
    %48 = vector.broadcast %47 : vector<1x64xf32> to vector<16x64xf32>
    %49 = arith.addf %46, %48 : vector<16x64xf32>
    %cst_32 = arith.constant 0.000000e+00 : f32
    %50 = vector.broadcast %cst_32 : f32 to vector<16x64xf32>
    %51 = arith.maximumf %49, %50 : vector<16x64xf32>
    %c0_33 = arith.constant 0 : index
    %c0_34 = arith.constant 0 : index
    %52 = vector.load %arg8[%c0_33, %c0_34] : memref<64x128xf32, #tpu.memory_space<vmem>>, vector<64x128xf32>
    %cst_35 = arith.constant dense<0.000000e+00> : vector<16x128xf32>
    %53 = tpu.matmul %51, %52, %cst_35 {dimension_numbers = #tpu.dot_dimension_numbers<[1], [0], [0], [1], [0, 0, 1, 1], [], []>} : vector<16x64xf32>, vector<64x128xf32>, vector<16x128xf32> -> vector<16x128xf32>
    %c0_36 = arith.constant 0 : index
    %c0_37 = arith.constant 0 : index
    %54 = vector.load %arg9[%c0_36, %c0_37] : memref<1x128xf32, #tpu.memory_space<vmem>>, vector<1x128xf32>
    %55 = vector.broadcast %54 : vector<1x128xf32> to vector<16x128xf32>
    %56 = arith.addf %53, %55 : vector<16x128xf32>
    %57 = vector.extract_strided_slice %56 {offsets = [0, 0], sizes = [16, 64], strides = [1, 1]} : vector<16x128xf32> to vector<16x64xf32>
    %cst_38 = arith.constant 0.000000e+00 : f32
    %58 = vector.broadcast %cst_38 : f32 to vector<16x64xf32>
    %59 = arith.maximumf %57, %58 : vector<16x64xf32>
    %60 = vector.extract_strided_slice %56 {offsets = [0, 64], sizes = [16, 64], strides = [1, 1]} : vector<16x128xf32> to vector<16x64xf32>
    %61 = arith.negf %60 : vector<16x64xf32>
    %62 = math.exp %61 : vector<16x64xf32>
    %cst_39 = arith.constant 1.000000e+00 : f32
    %63 = vector.broadcast %cst_39 : f32 to vector<16x64xf32>
    %64 = arith.addf %63, %62 : vector<16x64xf32>
    %65 = arith.divf %63, %64 : vector<16x64xf32>
    %66 = arith.mulf %65, %51 : vector<16x64xf32>
    %cst_40 = arith.constant 1.000000e+00 : f32
    %67 = vector.broadcast %cst_40 : f32 to vector<16x64xf32>
    %68 = arith.subf %67, %65 : vector<16x64xf32>
    %69 = arith.mulf %68, %59 : vector<16x64xf32>
    %70 = arith.addf %66, %69 : vector<16x64xf32>
    %c0_41 = arith.constant 0 : index
    %c0_42 = arith.constant 0 : index
    %71 = vector.load %arg2[%c0_41, %c0_42] : memref<16x32xf32, #tpu.memory_space<vmem>>, vector<16x32xf32>
    %c0_43 = arith.constant 0 : index
    %c0_44 = arith.constant 0 : index
    %72 = vector.load %arg10[%c0_43, %c0_44] : memref<32x128xf32, #tpu.memory_space<vmem>>, vector<32x128xf32>
    %cst_45 = arith.constant dense<0.000000e+00> : vector<16x128xf32>
    %73 = tpu.matmul %71, %72, %cst_45 {dimension_numbers = #tpu.dot_dimension_numbers<[1], [0], [0], [1], [0, 0, 1, 1], [], []>} : vector<16x32xf32>, vector<32x128xf32>, vector<16x128xf32> -> vector<16x128xf32>
    %c0_46 = arith.constant 0 : index
    %c0_47 = arith.constant 0 : index
    %74 = vector.load %arg11[%c0_46, %c0_47] : memref<64x128xf32, #tpu.memory_space<vmem>>, vector<64x128xf32>
    %cst_48 = arith.constant dense<0.000000e+00> : vector<16x128xf32>
    %75 = tpu.matmul %70, %74, %cst_48 {dimension_numbers = #tpu.dot_dimension_numbers<[1], [0], [0], [1], [0, 0, 1, 1], [], []>} : vector<16x64xf32>, vector<64x128xf32>, vector<16x128xf32> -> vector<16x128xf32>
    %76 = arith.addf %73, %75 : vector<16x128xf32>
    %c0_49 = arith.constant 0 : index
    %c0_50 = arith.constant 0 : index
    %77 = vector.load %arg12[%c0_49, %c0_50] : memref<1x128xf32, #tpu.memory_space<vmem>>, vector<1x128xf32>
    %78 = vector.broadcast %77 : vector<1x128xf32> to vector<16x128xf32>
    %79 = arith.addf %76, %78 : vector<16x128xf32>
    %c0_51 = arith.constant 0 : index
    %c0_52 = arith.constant 0 : index
    %80 = vector.load %arg13[%c0_51, %c0_52] : memref<16x128xf32, #tpu.memory_space<vmem>>, vector<16x128xf32>
    tpu.vector_store %arg13[%c0_51, %c0_52], %79 {strides = array<i32>} : memref<16x128xf32, #tpu.memory_space<vmem>>, vector<16x128xf32>,
    return
  }
  func.func @transform_0(%arg0: i32) -> (i32, i32) {
    %c0_i32 = arith.constant 0 : i32
    %c0_i32_0 = arith.constant 0 : i32
    return %arg0, %c0_i32 : i32, i32
  }
  func.func @transform_1(%arg0: i32) -> (i32, i32) {
    %c0_i32 = arith.constant 0 : i32
    %c0_i32_0 = arith.constant 0 : i32
    return %arg0, %c0_i32 : i32, i32
  }
  func.func @transform_2(%arg0: i32) -> (i32, i32) {
    %c0_i32 = arith.constant 0 : i32
    %c0_i32_0 = arith.constant 0 : i32
    %c0_i32_1 = arith.constant 0 : i32
    return %c0_i32, %c0_i32_0 : i32, i32
  }
  func.func @transform_3(%arg0: i32) -> (i32, i32, i32) {
    %c0_i32 = arith.constant 0 : i32
    %c0_i32_0 = arith.constant 0 : i32
    %c0_i32_1 = arith.constant 0 : i32
    %c0_i32_2 = arith.constant 0 : i32
    return %c0_i32, %c0_i32_0, %c0_i32_1 : i32, i32, i32
  }
  func.func @transform_4(%arg0: i32) -> (i32, i32, i32) {
    %c0_i32 = arith.constant 0 : i32
    %c0_i32_0 = arith.constant 0 : i32
    %c0_i32_1 = arith.constant 0 : i32
    %c0_i32_2 = arith.constant 0 : i32
    return %c0_i32, %c0_i32_0, %c0_i32_1 : i32, i32, i32
  }
  func.func @transform_5(%arg0: i32) -> (i32, i32, i32) {
    %c0_i32 = arith.constant 0 : i32
    %c0_i32_0 = arith.constant 0 : i32
    %c0_i32_1 = arith.constant 0 : i32
    %c0_i32_2 = arith.constant 0 : i32
    return %c0_i32, %c0_i32_0, %c0_i32_1 : i32, i32, i32
  }
  func.func @transform_6(%arg0: i32) -> (i32, i32) {
    %c0_i32 = arith.constant 0 : i32
    %c0_i32_0 = arith.constant 0 : i32
    %c0_i32_1 = arith.constant 0 : i32
    return %c0_i32, %c0_i32_0 : i32, i32
  }
  func.func @transform_7(%arg0: i32) -> (i32, i32) {
    %c0_i32 = arith.constant 0 : i32
    %c0_i32_0 = arith.constant 0 : i32
    %c0_i32_1 = arith.constant 0 : i32
    return %c0_i32, %c0_i32_0 : i32, i32
  }
  func.func @transform_8(%arg0: i32) -> (i32, i32) {
    %c0_i32 = arith.constant 0 : i32
    %c0_i32_0 = arith.constant 0 : i32
    %c0_i32_1 = arith.constant 0 : i32
    return %c0_i32, %c0_i32_0 : i32, i32
  }
  func.func @transform_9(%arg0: i32) -> (i32, i32) {
    %c0_i32 = arith.constant 0 : i32
    %c0_i32_0 = arith.constant 0 : i32
    %c0_i32_1 = arith.constant 0 : i32
    return %c0_i32, %c0_i32_0 : i32, i32
  }
  func.func @transform_10(%arg0: i32) -> (i32, i32) {
    %c0_i32 = arith.constant 0 : i32
    %c0_i32_0 = arith.constant 0 : i32
    %c0_i32_1 = arith.constant 0 : i32
    return %c0_i32, %c0_i32_0 : i32, i32
  }
  func.func @transform_11(%arg0: i32) -> (i32, i32) {
    %c0_i32 = arith.constant 0 : i32
    %c0_i32_0 = arith.constant 0 : i32
    %c0_i32_1 = arith.constant 0 : i32
    return %c0_i32, %c0_i32_0 : i32, i32
  }
  func.func @transform_12(%arg0: i32) -> (i32, i32) {
    %c0_i32 = arith.constant 0 : i32
    %c0_i32_0 = arith.constant 0 : i32
    return %arg0, %c0_i32 : i32, i32
  }
}

</mosaic_0001>

<bundles_post_ra>
// kernel: _lambda_.1
= control target key start
LH: loop header
LB: loop body
LE: loop exit
PB: predicated region body
PF: predicated region fallthrough
CT: control target
= control target key end

     0   :  { %17 = vsyncpa [#allocation3], 0  ;;  %s6041_s0 = inlined_call_operand.hbm [shape: s32[16,16], index: 0, kind: input, shape index: {}]   ;;  %s6042_s1 = inlined_call_operand.vmem [shape: f32[16,32], index: 1, kind: input, shape index: {}]   ;;  %s6043_s2 = inlined_call_operand.vmem [shape: f32[60,16], index: 2, kind: input, shape index: {}]   ;;  %s6044_s3 = inlined_call_operand.hbm [shape: f32[1,16,16], index: 3, kind: input, shape index: {}]   ;;  %s6045_s4 = inlined_call_operand.hbm [shape: f32[2,16,16], index: 4, kind: input, shape index: {}]   ;;  %s6046_s5 = inlined_call_operand.hbm [shape: f32[3,16,32], index: 5, kind: input, shape index: {}]   ;;  %s6047_s6 = inlined_call_operand.vmem [shape: f32[1,64], index: 6, kind: input, shape index: {}]   ;;  %s6048_s7 = inlined_call_operand.vmem [shape: f32[64,128], index: 7, kind: input, shape index: {}]   ;;  %s6049_s8 = inlined_call_operand.vmem [shape: f32[1,128], index: 8, kind: input, shape index: {}]   ;;  %s6050_s9 = inlined_call_operand.vmem [shape: f32[32,128], index: 9, kind: input, shape index: {}]   ;;  %s6051_s10 = inlined_call_operand.vmem [shape: f32[64,128], index: 10, kind: input, shape index: {}]   ;;  %s6052_s11 = inlined_call_operand.vmem [shape: f32[1,128], index: 11, kind: input, shape index: {}]   ;;  %s6053_s12 = inlined_call_operand.vmem [shape: f32[16,128], index: 12, kind: output, shape index: {}]  }
   0x1   :  { %18 = vsyncpa [#allocation5], 0 }
   0x2   :  { %19 = vsyncpa [#allocation8], 0  ;;  %s4592_s21 = smov [#allocation4]   ;;  %s4593_s23 = smov [#allocation2]  }
   0x3   :  { %s41_s22 = sshll.u32 %s4592_s21, 4  ;;  %s25_s24 = sshll.u32 %s4593_s23, 4  ;;  %s42_s22 = int_to_ptr.vmem [resolvable:$true] %s41_s22  ;;  %s4668_s24 = int_to_ptr.vmem [resolvable:$true] %s25_s24 }
   0x4   :  { %s4498_s27 = scalar_lea.hbm %s6044_s3, 256 }
   0x5   :  { %p4499_p0 = scmp.ne.s32.totalorder %s6044_s3, %s4498_s27  ;;  %p4502_p1 = scmp.lt.u32.totalorder %s4498_s27, %s6044_s3 }
   0x7   :  { %p4504_p2 = pnand %p4502_p1, %p4499_p0 }
   0x9   :  { %4507 = shalt.err (!%p4504_p2)
}
   0xa   :  { %s4508_s14 = scalar_lea.vmem %s42_s22, 256  ;;  %p4513_p4 = scmp.lt.s32.totalorder %s42_s22, %s42_s22 }
   0xb   :  { %p4509_p3 = scmp.ne.s32.totalorder %s42_s22, %s4508_s14  ;;  %p4514_p5 = scmp.lt.s32.totalorder %s4508_s14, %s4508_s14 }
   0xd   :  { %p4515_p6 = por %p4514_p5, %p4513_p4 }
   0xf   :  { %p4516_p7 = pnand %p4515_p6, %p4509_p3 }
  0x11   :  { %4519 = shalt.err (!%p4516_p7)
}
  0x12   :  { %s4594_s15 = smov 128   ;;  %s4595_s16 = smov 8  }
  0x13   :  { %47 = dma.hbm_to_vmem [thread:$0]  %s6044_s3, 256, %s42_s22, [#allocation5], %s4594_s15, %s4594_s15, %s4595_s16  }
  0x14   :  { %s4520_s21 = scalar_lea.hbm %s6041_s0, 256 }
  0x15   :  { %p4521_p8 = scmp.ne.s32.totalorder %s6041_s0, %s4520_s21  ;;  %p4524_p9 = scmp.lt.u32.totalorder %s4520_s21, %s6041_s0 }
  0x17   :  { %p4526_p10 = pnand %p4524_p9, %p4521_p8 }
  0x19   :  { %4529 = shalt.err (!%p4526_p10)
}
  0x1a   :  { %s4530_s28 = scalar_lea.vmem %s4668_s24, 256  ;;  %p4535_p12 = scmp.lt.s32.totalorder %s4668_s24, %s4668_s24 }
  0x1b   :  { %p4531_p11 = scmp.ne.s32.totalorder %s4668_s24, %s4530_s28  ;;  %p4536_p13 = scmp.lt.s32.totalorder %s4530_s28, %s4530_s28 }
  0x1d   :  { %p4537_p0 = por %p4536_p13, %p4535_p12 }
  0x1f   :  { %p4538_p1 = pnand %p4537_p0, %p4531_p11 }
  0x21   :  { %4541 = shalt.err (!%p4538_p1)
}
  0x22   :  { %31 = dma.hbm_to_vmem [thread:$0]  %s6041_s0, 256, %s4668_s24, [#allocation3], %s4594_s15, %s4594_s15, %s4595_s16  }
  0x23   :  { %s4596_s29 = smov [#allocation6]   ;;  %s4597_s13 = smov [#allocation7]  }
  0x24   :  { %s53_s30 = sshll.u32 %s4596_s29, 4  ;;  %s65_s14 = sshll.u32 %s4597_s13, 4  ;;  %s54_s30 = int_to_ptr.vmem [resolvable:$true] %s53_s30  ;;  %s4705_s14 = int_to_ptr.vmem [resolvable:$true] %s65_s14 }
  0x25   :  { %s4542_s19 = scalar_lea.hbm %s6045_s4, 512 }
  0x26   :  { %p4543_p2 = scmp.ne.s32.totalorder %s6045_s4, %s4542_s19  ;;  %p4546_p3 = scmp.lt.u32.totalorder %s4542_s19, %s6045_s4 }
  0x28   :  { %p4548_p4 = pnand %p4546_p3, %p4543_p2 }
  0x2a   :  { %4551 = shalt.err (!%p4548_p4)
}
  0x2b   :  { %s4552_s0 = scalar_lea.vmem %s54_s30, 512  ;;  %p4557_p6 = scmp.lt.s32.totalorder %s54_s30, %s54_s30 }
  0x2c   :  { %p4553_p5 = scmp.ne.s32.totalorder %s54_s30, %s4552_s0  ;;  %p4558_p7 = scmp.lt.s32.totalorder %s4552_s0, %s4552_s0 }
  0x2e   :  { %p4559_p8 = por %p4558_p7, %p4557_p6 }
  0x30   :  { %p4560_p9 = pnand %p4559_p8, %p4553_p5 }
  0x32   :  { %4563 = shalt.err (!%p4560_p9)
}
  0x33   :  { %59 = dma.hbm_to_vmem [thread:$0]  %s6045_s4, 512, %s54_s30, [#allocation5], %s4594_s15, %s4594_s15, %s4595_s16  }
  0x34   :  { %s4564_s3 = scalar_lea.hbm %s6046_s5, 768 }
  0x35   :  { %p4565_p10 = scmp.ne.s32.totalorder %s6046_s5, %s4564_s3  ;;  %p4568_p11 = scmp.lt.u32.totalorder %s4564_s3, %s6046_s5 }
  0x37   :  { %p4570_p12 = pnand %p4568_p11, %p4565_p10 }
  0x39   :  { %4573 = shalt.err (!%p4570_p12)
}
  0x3a   :  { %s4574_s18 = scalar_lea.vmem %s4705_s14, 768  ;;  %p4579_p0 = scmp.lt.s32.totalorder %s4705_s14, %s4705_s14 }
  0x3b   :  { %p4575_p13 = scmp.ne.s32.totalorder %s4705_s14, %s4574_s18  ;;  %p4580_p1 = scmp.lt.s32.totalorder %s4574_s18, %s4574_s18 }
  0x3d   :  { %p4581_p2 = por %p4580_p1, %p4579_p0 }
  0x3f   :  { %p4582_p3 = pnand %p4581_p2, %p4575_p13 }
  0x41   :  { %4585 = shalt.err (!%p4582_p3)
}
  0x42   :  { %71 = dma.hbm_to_vmem [thread:$0]  %s6046_s5, 768, %s4705_s14, [#allocation8], %s4594_s15, %s4594_s15, %s4595_s16  }
  0x43   :  { %4586 = dma.done.wait [#allocation3], 256  }
  0x44   :  { %4587 = vsyncadd [#allocation3], 4294967040 }
  0x45   :  { %4588 = dma.done.wait [#allocation5], 768  }
  0x46   :  { %4589 = vsyncadd [#allocation5], 4294966528 }
  0x47   :  { %4590 = dma.done.wait [#allocation8], 768  }
  0x48   :  { %4591 = vsyncadd [#allocation8], 4294966528  ;;  %v98_v0 = vlaneseq  ;;  %v96_v4 = vld [vmem:[#allocation2] sm:$0xff]  ;;  %v341_v8 = vld [vmem:[%s6043_s2 + $0x8] sm:$0xff]  ;;  %vm445_vm0 = vcmask 1043456   ;;  %vm4598_vm1 = vmmov 1  }
  0x49   :  { %v340_v7 = vld [vmem:[%s6043_s2] sm:$0xff]  ;;  %v342_v10 = vld [vmem:[%s6043_s2 + $0x10] sm:$0xff]  ;;  %v343_v11 = vld [vmem:[%s6043_s2 + $0x18] sm:$0xff]  ;;  %vm348_vm3 = vcmask 490496   ;;  %v4599_v46 = vmov 0.0   ;;  %s4601_s24 = smov 32  }
  0x4a   :  { %v4743_v1 = vshrl.u32 %v98_v0, 7  ;;  %v4393_v12 = vpack.c.bf16 %v341_v8, %v340_v7  ;;  %v4397_v13 = vpack.c.bf16 %v343_v11, %v342_v10  ;;  %v344_v16 = vld [vmem:[%s6043_s2 + $0x20] sm:$0xff]  ;;  %v345_v17 = vld [vmem:[%s6043_s2 + $0x28] sm:$0xff]  ;;  %v346_v21 = vld [vmem:[%s6043_s2 + $0x30] sm:$0xff]  ;;  %v4778_v43 = vand.u32 127, %v98_v0  ;;  %s4602_s27 = smov 64  }
  0x4b   :  { %v4401_v18 = vpack.c.bf16 %v345_v17, %v344_v16  ;;  %v347_v22 = vld [vmem:[%s6043_s2 + $0x38] sm:$0xf]  ;;  %vm4406_vm2 = vmpackc.low %vm445_vm0, %vm4598_vm1  ;;  %v97_v31 = vld [vmem:[#allocation2 + $0x8] sm:$0xff]  ;;  %s4600_s2 = smov 16  }
  0x4c   :  { %v102_v2 = vsub.s32 0, %v4743_v1  ;;  %v113_v3 = vsub.s32 1, %v4743_v1  ;;  %v124_v9 = vsub.s32 2, %v4743_v1  ;;  %v135_v15 = vsub.s32 3, %v4743_v1  ;;  %4394 = vmatprep.subr.bf16.mxu0 %v4393_v12  ;;  %v674_v39 = vld [vmem:[#allocation4] sm:$0xff]  ;;  %v675_v40 = vld [vmem:[#allocation4 + $0x8] sm:$0xff] }
  0x4d   :  { %4396 = vmatpush3.bf16.msra.mxu0 %v4393_v12  ;;  %v146_v20 = vsub.s32 4, %v4743_v1  ;;  %v4405_v23 = vpack.c.bf16 %v347_v22, %v346_v21  ;;  %v157_v25 = vsub.s32 5, %v4743_v1  ;;  %v168_v27 = vsub.s32 6, %v4743_v1 }
  0x4e   :  { %v103_v5 = vrot.slane %v96_v4, %v102_v2  ;;  %v114_v6 = vrot.slane %v96_v4, %v113_v3  ;;  %v125_v14 = vrot.slane %v96_v4, %v124_v9  ;;  %4398 = vmatprep.subr.bf16.mxu0 %v4397_v13  ;;  %v136_v19 = vrot.slane %v96_v4, %v135_v15 }
  0x4f   :  { %v147_v24 = vrot.slane %v96_v4, %v146_v20  ;;  %v158_v26 = vrot.slane %v96_v4, %v157_v25  ;;  %v169_v28 = vrot.slane %v96_v4, %v168_v27  ;;  %v179_v29 = vsub.s32 7, %v4743_v1 }
  0x50   :  { %105 = vbcast.lane.b32.xlu0 %v103_v5, 256  ;;  %116 = vbcast.lane.b32.xlu1 %v114_v6, 256  ;;  %v191_v32 = vrot.slane %v97_v31, %v102_v2  ;;  %v202_v33 = vrot.slane %v97_v31, %v113_v3  ;;  %v213_v34 = vrot.slane %v97_v31, %v124_v9 }
  0x51   :  { %4400 = vmatpush3.bf16.msra.mxu0 %v4397_v13  ;;  %v180_v30 = vrot.slane %v96_v4, %v179_v29  ;;  %v224_v35 = vrot.slane %v97_v31, %v135_v15  ;;  %v235_v36 = vrot.slane %v97_v31, %v146_v20  ;;  %v246_v37 = vrot.slane %v97_v31, %v157_v25 }
  0x52   :  { %4402 = vmatprep.subr.bf16.mxu0 %v4401_v18  ;;  %v257_v38 = vrot.slane %v97_v31, %v168_v27  ;;  %v4411_v41 = vpack.c.bf16 %v675_v40, %v674_v39  ;;  %v268_v42 = vrot.slane %v97_v31, %v179_v29 }
  0x54   :  { %109 = vbcast.lane.b32.xlu0 %v103_v5, 264  ;;  %120 = vbcast.lane.b32.xlu1 %v114_v6, 264 }
  0x55   :  { %4404 = vmatpush3.bf16.msra.mxu0 %v4401_v18  ;;  %4475 = vmatprep.subr.bf16.mxu1 %v4411_v41 }
  0x56   :  { %4407 = vmatprep.subr.msk.bf16.mxu0 %vm4406_vm2, %v4405_v23  ;;  %4476 = vmatpush3.bf16.msra.mxu1 %v4411_v41 }
  0x58   :  { %127 = vbcast.lane.b32.xlu0 %v125_v14, 256  ;;  %131 = vbcast.lane.b32.xlu1 %v125_v14, 264 }
  0x59   :  { %4410 = vmatpush3.bf16.msk.msra.mxu0 %vm4406_vm2, %v4405_v23 }
  0x5a   :  { %4412 = vmatprep.subr.bf16.mxu0 %v4411_v41 }
  0x5c   :  { %138 = vbcast.lane.b32.xlu0 %v136_v19, 256  ;;  %142 = vbcast.lane.b32.xlu1 %v136_v19, 264 }
  0x60   :  { %149 = vbcast.lane.b32.xlu0 %v147_v24, 256  ;;  %153 = vbcast.lane.b32.xlu1 %v147_v24, 264 }
  0x64   :  { %160 = vbcast.lane.b32.xlu0 %v158_v26, 256  ;;  %164 = vbcast.lane.b32.xlu1 %v158_v26, 264 }
  0x68   :  { %171 = vbcast.lane.b32.xlu0 %v169_v28, 256  ;;  %175 = vbcast.lane.b32.xlu1 %v169_v28, 264 }
  0x6c   :  { %182 = vbcast.lane.b32.xlu0 %v180_v30, 256  ;;  %186 = vbcast.lane.b32.xlu1 %v180_v30, 264 }
  0x70   :  { %193 = vbcast.lane.b32.xlu0 %v191_v32, 256  ;;  %197 = vbcast.lane.b32.xlu1 %v191_v32, 264 }
  0x74   :  { %204 = vbcast.lane.b32.xlu0 %v202_v33, 256  ;;  %208 = vbcast.lane.b32.xlu1 %v202_v33, 264 }
  0x78   :  { %215 = vbcast.lane.b32.xlu0 %v213_v34, 256  ;;  %219 = vbcast.lane.b32.xlu1 %v213_v34, 264 }
  0x7c   :  { %226 = vbcast.lane.b32.xlu0 %v224_v35, 256  ;;  %230 = vbcast.lane.b32.xlu1 %v224_v35, 264 }
  0x80   :  { %237 = vbcast.lane.b32.xlu0 %v235_v36, 256  ;;  %241 = vbcast.lane.b32.xlu1 %v235_v36, 264 }
  0x84   :  { %248 = vbcast.lane.b32.xlu0 %v246_v37, 256  ;;  %252 = vbcast.lane.b32.xlu1 %v246_v37, 264 }
  0x88   :  { %259 = vbcast.lane.b32.xlu0 %v257_v38, 256  ;;  %263 = vbcast.lane.b32.xlu1 %v257_v38, 264 }
  0x8c   :  { %270 = vbcast.lane.b32.xlu0 %v268_v42, 256  ;;  %274 = vbcast.lane.b32.xlu1 %v268_v42, 264 }
  0xc2   :  { %v106_v44 = vpop.permute.xlu0 %105  ;;  %v117_v45 = vpop.permute.xlu1 %116 }
  0xc3   :  { %vm276_vm4 = vcmp.eq.s32.totalorder %v106_v44, %v4778_v43  ;;  %vm278_vm5 = vcmp.eq.s32.totalorder %v117_v45, %v4778_v43 }
  0xc4   :  { %v308_v47 = vsel %vm276_vm4, 1.0, %v4599_v46  ;;  %v310_v50 = vsel %vm278_vm5, 1.0, %v4599_v46 }
  0xc5   :  { %3984 = vmatprep.mubr.msk.f32.mxu0 %vm348_vm3, %v308_v47  ;;  %v1370_v47 = vld [vmem:[#allocation6 + $0x10] sm:$0xff] }
  0xc6   :  { %v110_v48 = vpop.permute.xlu0 %109  ;;  %v121_v49 = vpop.permute.xlu1 %120 }
  0xc7   :  { %vm277_vm6 = vcmp.eq.s32.totalorder %v110_v48, %v4778_v43  ;;  %vm279_vm7 = vcmp.eq.s32.totalorder %v121_v49, %v4778_v43  ;;  %v1371_v48 = vld [vmem:[#allocation6 + $0x18] sm:$0xff] }
  0xc8   :  { %v309_v51 = vsel %vm277_vm6, 1.0, %v4599_v46  ;;  %v311_v52 = vsel %vm279_vm7, 1.0, %v4599_v46  ;;  %v4419_v49 = vpack.c.bf16 %v1371_v48, %v1370_v47 }
  0xc9   :  { %3985 = vmatmul.mubr.msk.f32.vlgmr.msra.gmra.mrb[0].mxu0 %vm348_vm3, %v309_v51  ;;  %v1143_v51 = vld [vmem:[#allocation6 + $0x8] sm:$0xff] }
  0xca   :  { %3987 = vmatprep.mubr.msk.f32.mxu0 %vm348_vm3, %v310_v50  ;;  %v128_v53 = vpop.permute.xlu0 %127  ;;  %v132_v54 = vpop.permute.xlu1 %131  ;;  %4414 = vmatpush3.bf16.msra.mxu0 %v4411_v41  ;;  %v1142_v50 = vld [vmem:[#allocation6] sm:$0xff] }
  0xcb   :  { %vm280_vm8 = vcmp.eq.s32.totalorder %v128_v53, %v4778_v43  ;;  %vm281_vm9 = vcmp.eq.s32.totalorder %v132_v54, %v4778_v43  ;;  %4420 = vmatprep.subr.bf16.mxu0 %v4419_v49  ;;  %v2115_v53 = vld [vmem:[#allocation7 + $0x10] sm:$0xff] }
  0xcc   :  { %v312_v55 = vsel %vm280_vm8, 1.0, %v4599_v46  ;;  %v313_v56 = vsel %vm281_vm9, 1.0, %v4599_v46 }
  0xcd   :  { %3988 = vmatmul.mubr.msk.f32.gmra.mrb[2].mxu0 %vm348_vm3, %v311_v52  ;;  %v4415_v52 = vpack.c.bf16 %v1143_v51, %v1142_v50 }
  0xce   :  { %3990 = vmatprep.mubr.msk.f32.mxu0 %vm348_vm3, %v312_v55  ;;  %v139_v57 = vpop.permute.xlu0 %138  ;;  %v143_v58 = vpop.permute.xlu1 %142 }
  0xcf   :  { %vm282_vm10 = vcmp.eq.s32.totalorder %v139_v57, %v4778_v43  ;;  %vm283_vm11 = vcmp.eq.s32.totalorder %v143_v58, %v4778_v43  ;;  %4416 = vmatprep.subr.bf16.mxu1 %v4415_v52 }
  0xd0   :  { %v314_v59 = vsel %vm282_vm10, 1.0, %v4599_v46  ;;  %v315_v60 = vsel %vm283_vm11, 1.0, %v4599_v46 }
  0xd1   :  { %3991 = vmatmul.mubr.msk.f32.gmra.mrb[4].mxu0 %vm348_vm3, %v313_v56 }
  0xd2   :  { %3993 = vmatprep.mubr.msk.f32.mxu0 %vm348_vm3, %v314_v59  ;;  %v150_v61 = vpop.permute.xlu0 %149  ;;  %v154_v62 = vpop.permute.xlu1 %153 }
  0xd3   :  { %vm284_vm12 = vcmp.eq.s32.totalorder %v150_v61, %v4778_v43  ;;  %vm285_vm13 = vcmp.eq.s32.totalorder %v154_v62, %v4778_v43  ;;  %v1888_v61 = vld [vmem:[#allocation7 + $0x8] sm:$0xff] }
  0xd4   :  { %v316_v63 = vsel %vm284_vm12, 1.0, %v4599_v46  ;;  %v317_v0 = vsel %vm285_vm13, 1.0, %v4599_v46 }
  0xd5   :  { %3994 = vmatmul.mubr.msk.f32.gmra.mrb[6].mxu0 %vm348_vm3, %v315_v60  ;;  %v1887_v60 = vld [vmem:[#allocation7] sm:$0xff] }
  0xd6   :  { %3996 = vmatprep.mubr.msk.f32.mxu0 %vm348_vm3, %v316_v63  ;;  %v161_v1 = vpop.permute.xlu0 %160  ;;  %v165_v2 = vpop.permute.xlu1 %164 }
  0xd7   :  { %vm286_vm14 = vcmp.eq.s32.totalorder %v161_v1, %v4778_v43  ;;  %vm287_vm15 = vcmp.eq.s32.totalorder %v165_v2, %v4778_v43 }
  0xd8   :  { %v318_v3 = vsel %vm286_vm14, 1.0, %v4599_v46  ;;  %v319_v4 = vsel %vm287_vm15, 1.0, %v4599_v46 }
  0xd9   :  { %3997 = vmatmul.mubr.msk.f32.gmra.mrb[8].mxu0 %vm348_vm3, %v317_v0  ;;  %v4906_v0 = vpack.c.bf16 %v1888_v61, %v1887_v60 }
  0xda   :  { %3999 = vmatprep.mubr.msk.f32.mxu0 %vm348_vm3, %v318_v3  ;;  %v172_v5 = vpop.permute.xlu0 %171  ;;  %v176_v6 = vpop.permute.xlu1 %175 }
  0xdb   :  { %vm288_vm0 = vcmp.eq.s32.totalorder %v172_v5, %v4778_v43  ;;  %vm289_vm1 = vcmp.eq.s32.totalorder %v176_v6, %v4778_v43 }
  0xdc   :  { %v320_v7 = vsel %vm288_vm0, 1.0, %v4599_v46  ;;  %v321_v8 = vsel %vm289_vm1, 1.0, %v4599_v46 }
  0xdd   :  { %4000 = vmatmul.mubr.msk.f32.gmra.mrb[10].mxu0 %vm348_vm3, %v319_v4 }
  0xde   :  { %4002 = vmatprep.mubr.msk.f32.mxu0 %vm348_vm3, %v320_v7  ;;  %v183_v9 = vpop.permute.xlu0 %182  ;;  %v187_v10 = vpop.permute.xlu1 %186 }
  0xdf   :  { %vm290_vm2 = vcmp.eq.s32.totalorder %v183_v9, %v4778_v43  ;;  %vm291_vm4 = vcmp.eq.s32.totalorder %v187_v10, %v4778_v43 }
  0xe0   :  { %v322_v11 = vsel %vm290_vm2, 1.0, %v4599_v46  ;;  %v323_v12 = vsel %vm291_vm4, 1.0, %v4599_v46 }
  0xe1   :  { %4003 = vmatmul.mubr.msk.f32.gmra.mrb[12].mxu0 %vm348_vm3, %v321_v8 }
  0xe2   :  { %4005 = vmatprep.mubr.msk.f32.mxu0 %vm348_vm3, %v322_v11  ;;  %v194_v13 = vpop.permute.xlu0 %193  ;;  %v198_v14 = vpop.permute.xlu1 %197 }
  0xe3   :  { %vm292_vm5 = vcmp.eq.s32.totalorder %v194_v13, %v4778_v43  ;;  %vm293_vm6 = vcmp.eq.s32.totalorder %v198_v14, %v4778_v43 }
  0xe4   :  { %v324_v15 = vsel %vm292_vm5, 1.0, %v4599_v46  ;;  %v325_v16 = vsel %vm293_vm6, 1.0, %v4599_v46  ;;  %vm676_vm6 = vcmask 130048  }
  0xe5   :  { %4006 = vmatmul.mubr.msk.f32.gmra.mrb[14].mxu0 %vm348_vm3, %v323_v12 }
  0xe6   :  { %4008 = vmatprep.mubr.msk.f32.mxu0 %vm348_vm3, %v324_v15  ;;  %v205_v17 = vpop.permute.xlu0 %204  ;;  %v209_v18 = vpop.permute.xlu1 %208 }
  0xe7   :  { %vm294_vm7 = vcmp.eq.s32.totalorder %v205_v17, %v4778_v43  ;;  %vm295_vm8 = vcmp.eq.s32.totalorder %v209_v18, %v4778_v43 }
  0xe8   :  { %v326_v19 = vsel %vm294_vm7, 1.0, %v4599_v46  ;;  %v327_v20 = vsel %vm295_vm8, 1.0, %v4599_v46  ;;  %vm3021_vm7 = vcmask 1041409   ;;  %vm3023_vm8 = vcmask 1042434  }
  0xe9   :  { %4009 = vmatmul.mubr.msk.f32.gmra.mrb[16].mxu0 %vm348_vm3, %v325_v16 }
  0xea   :  { %4011 = vmatprep.mubr.msk.f32.mxu0 %vm348_vm3, %v326_v19  ;;  %v216_v21 = vpop.permute.xlu0 %215  ;;  %v220_v22 = vpop.permute.xlu1 %219 }
  0xeb   :  { %vm296_vm9 = vcmp.eq.s32.totalorder %v216_v21, %v4778_v43  ;;  %vm297_vm10 = vcmp.eq.s32.totalorder %v220_v22, %v4778_v43 }
  0xec   :  { %v328_v23 = vsel %vm296_vm9, 1.0, %v4599_v46  ;;  %v329_v24 = vsel %vm297_vm10, 1.0, %v4599_v46  ;;  %vm3025_vm9 = vcmask 1043459   ;;  %vm3027_vm10 = vcmask 1044484  }
  0xed   :  { %4012 = vmatmul.mubr.msk.f32.gmra.mrb[18].mxu0 %vm348_vm3, %v327_v20 }
  0xee   :  { %4014 = vmatprep.mubr.msk.f32.mxu0 %vm348_vm3, %v328_v23  ;;  %v227_v25 = vpop.permute.xlu0 %226  ;;  %v231_v26 = vpop.permute.xlu1 %230 }
  0xef   :  { %vm298_vm11 = vcmp.eq.s32.totalorder %v227_v25, %v4778_v43  ;;  %vm299_vm12 = vcmp.eq.s32.totalorder %v231_v26, %v4778_v43  ;;  %v2487_v25 = vld [vmem:[#allocation7 + $0x20] sm:$0xff]  ;;  %v2488_v26 = vld [vmem:[#allocation7 + $0x28] sm:$0xff] }
  0xf0   :  { %v330_v27 = vsel %vm298_vm11, 1.0, %v4599_v46  ;;  %v331_v28 = vsel %vm299_vm12, 1.0, %v4599_v46  ;;  %vm3029_vm11 = vcmask 1045509   ;;  %vm3031_vm12 = vcmask 1046534  }
  0xf1   :  { %4015 = vmatmul.mubr.msk.f32.gmra.mrb[20].mxu0 %vm348_vm3, %v329_v24 }
  0xf2   :  { %4017 = vmatprep.mubr.msk.f32.mxu0 %vm348_vm3, %v330_v27  ;;  %v238_v29 = vpop.permute.xlu0 %237  ;;  %v242_v30 = vpop.permute.xlu1 %241  ;;  %v5063_v27 = vpack.c.bf16 %v2488_v26, %v2487_v25 }
  0xf3   :  { %vm300_vm13 = vcmp.eq.s32.totalorder %v238_v29, %v4778_v43  ;;  %vm301_vm14 = vcmp.eq.s32.totalorder %v242_v30, %v4778_v43 }
  0xf4   :  { %v332_v31 = vsel %vm300_vm13, 1.0, %v4599_v46  ;;  %v333_v32 = vsel %vm301_vm14, 1.0, %v4599_v46  ;;  %vm3033_vm13 = vcmask 1047559   ;;  %vm1743_vm14 = vcmask 129024  }
  0xf5   :  { %4018 = vmatmul.mubr.msk.f32.gmra.mrb[22].mxu0 %vm348_vm3, %v331_v28 }
  0xf6   :  { %4020 = vmatprep.mubr.msk.f32.mxu0 %vm348_vm3, %v332_v31  ;;  %v249_v33 = vpop.permute.xlu0 %248  ;;  %v253_v34 = vpop.permute.xlu1 %252 }
  0xf7   :  { %vm302_vm15 = vcmp.eq.s32.totalorder %v249_v33, %v4778_v43  ;;  %vm303_vm0 = vcmp.eq.s32.totalorder %v253_v34, %v4778_v43 }
  0xf8   :  { %v334_v35 = vsel %vm302_vm15, 1.0, %v4599_v46  ;;  %v335_v36 = vsel %vm303_vm0, 1.0, %v4599_v46  ;;  %vm2746_vm15 = vcmask 1045504   ;;  %vm2861_vm0 = vcmask 259072  }
  0xf9   :  { %4021 = vmatmul.mubr.msk.f32.gmra.mrb[24].mxu0 %vm348_vm3, %v333_v32 }
  0xfa   :  { %4023 = vmatprep.mubr.msk.f32.mxu0 %vm348_vm3, %v334_v35  ;;  %v260_v37 = vpop.permute.xlu0 %259  ;;  %v264_v38 = vpop.permute.xlu1 %263 }
  0xfb   :  { %vm304_vm1 = vcmp.eq.s32.totalorder %v260_v37, %v4778_v43  ;;  %vm305_vm2 = vcmp.eq.s32.totalorder %v264_v38, %v4778_v43 }
  0xfc   :  { %v336_v39 = vsel %vm304_vm1, 1.0, %v4599_v46  ;;  %v337_v40 = vsel %vm305_vm2, 1.0, %v4599_v46  ;;  %vm2859_vm1 = vcmask 261120   ;;  %vm3146_vm2 = vcmask 523264  }
  0xfd   :  { %4024 = vmatmul.mubr.msk.f32.gmra.mrb[26].mxu0 %vm348_vm3, %v335_v36 }
  0xfe   :  { %4026 = vmatprep.mubr.msk.f32.mxu0 %vm348_vm3, %v336_v39  ;;  %v271_v41 = vpop.permute.xlu0 %270  ;;  %v275_v42 = vpop.permute.xlu1 %274 }
  0xff   :  { %vm306_vm4 = vcmp.eq.s32.totalorder %v271_v41, %v4778_v43  ;;  %vm307_vm5 = vcmp.eq.s32.totalorder %v275_v42, %v4778_v43  ;;  %v2116_v43 = vld [vmem:[#allocation7 + $0x18] sm:$0xff] }
 0x100   :  { %v338_v44 = vsel %vm306_vm4, 1.0, %v4599_v46  ;;  %v339_v45 = vsel %vm307_vm5, 1.0, %v4599_v46  ;;  %v4427_v55 = vpack.c.bf16 %v2116_v43, %v2115_v53 }
 0x101   :  { %4027 = vmatmul.mubr.msk.f32.gmra.mrb[28].mxu0 %vm348_vm3, %v337_v40 }
 0x102   :  { %4029 = vmatprep.mubr.msk.f32.mxu0 %vm348_vm3, %v338_v44 }
 0x105   :  { %4030 = vmatmul.mubr.msk.f32.gmra.mrb[30].mxu0 %vm348_vm3, %v339_v45  ;;  %vm1629_vm3 = vcmask 1046528  }
 0x19c   :  { %v4876_v54 = vpop.f32.mrb[0].mxu0 }
 0x19d   :  { %v4878_v46 = vpop.f32.mrb[1].mxu0 }
 0x19e   :  { %4036 = vmatprep.mubr.msk.f32.mxu0 %vm676_vm6, %v4878_v46 }
 0x19f   :  { %4037 = vmatmul.mubr.msk.f32.vlgmr.msra.gmra.mrb[32].mxu0 %vm676_vm6, %v4876_v54 }
 0x1a0   :  { %v4884_v56 = vpop.f32.mrb[2].mxu0  ;;  %4422 = vmatpush3.bf16.msra.mxu0 %v4419_v49 }
 0x1a1   :  { %v4886_v57 = vpop.f32.mrb[3].mxu0  ;;  %4428 = vmatprep.subr.bf16.mxu0 %v4427_v55 }
 0x1a2   :  { %4039 = vmatprep.mubr.msk.f32.mxu0 %vm676_vm6, %v4886_v57 }
 0x1a3   :  { %4040 = vmatmul.mubr.msk.f32.gmra.mrb[34].mxu0 %vm676_vm6, %v4884_v56 }
 0x1a4   :  { %v4892_v58 = vpop.f32.mrb[4].mxu0 }
 0x1a5   :  { %v4894_v59 = vpop.f32.mrb[5].mxu0 }
 0x1a6   :  { %4042 = vmatprep.mubr.msk.f32.mxu0 %vm676_vm6, %v4894_v59 }
 0x1a7   :  { %4043 = vmatmul.mubr.msk.f32.gmra.mrb[36].mxu0 %vm676_vm6, %v4892_v58 }
 0x1a8   :  { %v4900_v62 = vpop.f32.mrb[6].mxu0  ;;  %4140 = vmatprep.mubr.msk.f32.mxu0 %vm676_vm6, %v4878_v46 }
 0x1a9   :  { %v4904_v63 = vpop.f32.mrb[7].mxu0 }
 0x1aa   :  { %4045 = vmatprep.mubr.msk.f32.mxu1 %vm676_vm6, %v4904_v63 }
 0x1ab   :  { %4046 = vmatmul.mubr.msk.f32.vlgmr.msra.gmra.mrb[0].mxu1 %vm676_vm6, %v4900_v62  ;;  %4141 = vmatmul.mubr.msk.f32.vlgmr.msra.gmra.mrb[38].mxu0 %vm676_vm6, %v4876_v54 }
 0x1ac   :  { %4418 = vmatpush3.bf16.msra.mxu1 %v4415_v52  ;;  %v4914_v1 = vpop.f32.mrb[8].mxu0  ;;  %4143 = vmatprep.mubr.msk.f32.mxu0 %vm676_vm6, %v4886_v57 }
 0x1ad   :  { %v4918_v2 = vpop.f32.mrb[9].mxu0  ;;  %4424 = vmatprep.subr.bf16.mxu1 %v4906_v0  ;;  %4430 = vmatpush3.bf16.msra.mxu0 %v4427_v55 }
 0x1ae   :  { %4048 = vmatprep.mubr.msk.f32.mxu1 %vm676_vm6, %v4918_v2 }
 0x1af   :  { %4049 = vmatmul.mubr.msk.f32.gmra.mrb[2].mxu1 %vm676_vm6, %v4914_v1  ;;  %4144 = vmatmul.mubr.msk.f32.gmra.mrb[40].mxu0 %vm676_vm6, %v4884_v56 }
 0x1b0   :  { %v4927_v3 = vpop.f32.mrb[10].mxu0  ;;  %4146 = vmatprep.mubr.msk.f32.mxu0 %vm676_vm6, %v4894_v59 }
 0x1b1   :  { %v4931_v4 = vpop.f32.mrb[11].mxu0 }
 0x1b2   :  { %4051 = vmatprep.mubr.msk.f32.mxu1 %vm676_vm6, %v4931_v4 }
 0x1b3   :  { %4052 = vmatmul.mubr.msk.f32.gmra.mrb[4].mxu1 %vm676_vm6, %v4927_v3  ;;  %4147 = vmatmul.mubr.msk.f32.gmra.mrb[42].mxu0 %vm676_vm6, %v4892_v58 }
 0x1b4   :  { %v4939_v5 = vpop.f32.mrb[12].mxu0  ;;  %4149 = vmatprep.mubr.msk.f32.mxu0 %vm676_vm6, %v4904_v63 }
 0x1b5   :  { %v4943_v6 = vpop.f32.mrb[13].mxu0 }
 0x1b6   :  { %4054 = vmatprep.mubr.msk.f32.mxu1 %vm676_vm6, %v4943_v6 }
 0x1b7   :  { %4055 = vmatmul.mubr.msk.f32.gmra.mrb[6].mxu1 %vm676_vm6, %v4939_v5  ;;  %4150 = vmatmul.mubr.msk.f32.gmra.mrb[44].mxu0 %vm676_vm6, %v4900_v62 }
 0x1b8   :  { %v4951_v7 = vpop.f32.mrb[14].mxu0  ;;  %4152 = vmatprep.mubr.msk.f32.mxu0 %vm676_vm6, %v4918_v2 }
 0x1b9   :  { %v4955_v8 = vpop.f32.mrb[15].mxu0 }
 0x1ba   :  { %4057 = vmatprep.mubr.msk.f32.mxu1 %vm676_vm6, %v4955_v8 }
 0x1bb   :  { %4058 = vmatmul.mubr.msk.f32.gmra.mrb[8].mxu1 %vm676_vm6, %v4951_v7  ;;  %4153 = vmatmul.mubr.msk.f32.gmra.mrb[46].mxu0 %vm676_vm6, %v4914_v1 }
 0x1bc   :  { %v4963_v9 = vpop.f32.mrb[16].mxu0  ;;  %4155 = vmatprep.mubr.msk.f32.mxu0 %vm676_vm6, %v4931_v4 }
 0x1bd   :  { %v4967_v10 = vpop.f32.mrb[17].mxu0 }
 0x1be   :  { %4060 = vmatprep.mubr.msk.f32.mxu1 %vm676_vm6, %v4967_v10 }
 0x1bf   :  { %4061 = vmatmul.mubr.msk.f32.gmra.mrb[10].mxu1 %vm676_vm6, %v4963_v9  ;;  %4156 = vmatmul.mubr.msk.f32.gmra.mrb[48].mxu0 %vm676_vm6, %v4927_v3 }
 0x1c0   :  { %v4975_v11 = vpop.f32.mrb[18].mxu0  ;;  %4158 = vmatprep.mubr.msk.f32.mxu0 %vm676_vm6, %v4943_v6 }
 0x1c1   :  { %v4979_v12 = vpop.f32.mrb[19].mxu0 }
 0x1c2   :  { %4063 = vmatprep.mubr.msk.f32.mxu1 %vm676_vm6, %v4979_v12 }
 0x1c3   :  { %4064 = vmatmul.mubr.msk.f32.gmra.mrb[12].mxu1 %vm676_vm6, %v4975_v11  ;;  %4159 = vmatmul.mubr.msk.f32.gmra.mrb[50].mxu0 %vm676_vm6, %v4939_v5 }
 0x1c4   :  { %v4987_v13 = vpop.f32.mrb[20].mxu0  ;;  %4161 = vmatprep.mubr.msk.f32.mxu0 %vm676_vm6, %v4955_v8 }
 0x1c5   :  { %v4991_v14 = vpop.f32.mrb[21].mxu0 }
 0x1c6   :  { %4066 = vmatprep.mubr.msk.f32.mxu1 %vm676_vm6, %v4991_v14 }
 0x1c7   :  { %4067 = vmatmul.mubr.msk.f32.gmra.mrb[14].mxu1 %vm676_vm6, %v4987_v13  ;;  %4162 = vmatmul.mubr.msk.f32.gmra.mrb[52].mxu0 %vm676_vm6, %v4951_v7 }
 0x1c8   :  { %v4999_v15 = vpop.f32.mrb[22].mxu0  ;;  %4164 = vmatprep.mubr.msk.f32.mxu0 %vm676_vm6, %v4967_v10 }
 0x1c9   :  { %v5003_v16 = vpop.f32.mrb[23].mxu0 }
 0x1ca   :  { %4069 = vmatprep.mubr.msk.f32.mxu1 %vm676_vm6, %v5003_v16 }
 0x1cb   :  { %4070 = vmatmul.mubr.msk.f32.gmra.mrb[16].mxu1 %vm676_vm6, %v4999_v15  ;;  %4165 = vmatmul.mubr.msk.f32.gmra.mrb[54].mxu0 %vm676_vm6, %v4963_v9 }
 0x1cc   :  { %v5011_v17 = vpop.f32.mrb[24].mxu0  ;;  %4167 = vmatprep.mubr.msk.f32.mxu0 %vm676_vm6, %v4979_v12 }
 0x1cd   :  { %v5015_v18 = vpop.f32.mrb[25].mxu0 }
 0x1ce   :  { %4072 = vmatprep.mubr.msk.f32.mxu1 %vm676_vm6, %v5015_v18 }
 0x1cf   :  { %4073 = vmatmul.mubr.msk.f32.gmra.mrb[18].mxu1 %vm676_vm6, %v5011_v17  ;;  %4168 = vmatmul.mubr.msk.f32.gmra.mrb[56].mxu0 %vm676_vm6, %v4975_v11 }
 0x1d0   :  { %v5023_v19 = vpop.f32.mrb[26].mxu0  ;;  %4170 = vmatprep.mubr.msk.f32.mxu0 %vm676_vm6, %v4991_v14 }
 0x1d1   :  { %v5027_v20 = vpop.f32.mrb[27].mxu0 }
 0x1d2   :  { %4075 = vmatprep.mubr.msk.f32.mxu1 %vm676_vm6, %v5027_v20 }
 0x1d3   :  { %4076 = vmatmul.mubr.msk.f32.gmra.mrb[20].mxu1 %vm676_vm6, %v5023_v19  ;;  %4171 = vmatmul.mubr.msk.f32.gmra.mrb[58].mxu0 %vm676_vm6, %v4987_v13 }
 0x1d4   :  { %v5035_v21 = vpop.f32.mrb[28].mxu0  ;;  %4173 = vmatprep.mubr.msk.f32.mxu0 %vm676_vm6, %v5003_v16 }
 0x1d5   :  { %v5039_v22 = vpop.f32.mrb[29].mxu0 }
 0x1d6   :  { %4078 = vmatprep.mubr.msk.f32.mxu1 %vm676_vm6, %v5039_v22 }
 0x1d7   :  { %4079 = vmatmul.mubr.msk.f32.gmra.mrb[22].mxu1 %vm676_vm6, %v5035_v21  ;;  %4174 = vmatmul.mubr.msk.f32.gmra.mrb[60].mxu0 %vm676_vm6, %v4999_v15 }
 0x1d8   :  { %v5047_v23 = vpop.f32.mrb[30].mxu0  ;;  %4176 = vmatprep.mubr.msk.f32.mxu0 %vm676_vm6, %v5015_v18 }
 0x1d9   :  { %v5051_v24 = vpop.f32.mrb[31].mxu0 }
 0x1da   :  { %4081 = vmatprep.mubr.msk.f32.mxu1 %vm676_vm6, %v5051_v24 }
 0x1db   :  { %4082 = vmatmul.mubr.msk.f32.gmra.mrb[24].mxu1 %vm676_vm6, %v5047_v23  ;;  %4177 = vmatmul.mubr.msk.f32.gmra.mrb[62].mxu0 %vm676_vm6, %v5011_v17 }
 0x1dc   :  { %4088 = vmatprep.mubr.msk.f32.mxu1 %vm676_vm6, %v4878_v46  ;;  %4179 = vmatprep.mubr.msk.f32.mxu0 %vm676_vm6, %v5027_v20 }
 0x1df   :  { %4089 = vmatmul.mubr.msk.f32.vlgmr.msra.gmra.mrb[26].mxu1 %vm676_vm6, %v4876_v54  ;;  %4180 = vmatmul.mubr.msk.f32.gmra.mrb[64].mxu0 %vm676_vm6, %v5023_v19 }
 0x1e0   :  { %4426 = vmatpush3.bf16.msra.mxu1 %v4906_v0  ;;  %4091 = vmatprep.mubr.msk.f32.mxu1 %vm676_vm6, %v4886_v57 }
 0x1e1   :  { %4182 = vmatprep.mubr.msk.f32.mxu0 %vm676_vm6, %v5039_v22  ;;  %4432 = vmatprep.subr.bf16.mxu1 %v5063_v27 }
 0x1e3   :  { %4092 = vmatmul.mubr.msk.f32.gmra.mrb[28].mxu1 %vm676_vm6, %v4884_v56  ;;  %4183 = vmatmul.mubr.msk.f32.gmra.mrb[66].mxu0 %vm676_vm6, %v5035_v21 }
 0x1e4   :  { %4094 = vmatprep.mubr.msk.f32.mxu1 %vm676_vm6, %v4894_v59  ;;  %4185 = vmatprep.mubr.msk.f32.mxu0 %vm676_vm6, %v5051_v24 }
 0x1e7   :  { %4095 = vmatmul.mubr.msk.f32.gmra.mrb[30].mxu1 %vm676_vm6, %v4892_v58  ;;  %4186 = vmatmul.mubr.msk.f32.gmra.mrb[68].mxu0 %vm676_vm6, %v5047_v23 }
 0x1e8   :  { %4097 = vmatprep.mubr.msk.f32.mxu1 %vm676_vm6, %v4904_v63  ;;  %4244 = vmatprep.mubr.msk.f32.mxu0 %vm676_vm6, %v4878_v46 }
 0x1eb   :  { %4098 = vmatmul.mubr.msk.f32.gmra.mrb[32].mxu1 %vm676_vm6, %v4900_v62  ;;  %4245 = vmatmul.mubr.msk.f32.vlgmr.msra.gmra.mrb[70].mxu0 %vm676_vm6, %v4876_v54 }
 0x1ec   :  { %4100 = vmatprep.mubr.msk.f32.mxu1 %vm676_vm6, %v4918_v2  ;;  %4247 = vmatprep.mubr.msk.f32.mxu0 %vm676_vm6, %v4886_v57 }
 0x1ef   :  { %4101 = vmatmul.mubr.msk.f32.gmra.mrb[34].mxu1 %vm676_vm6, %v4914_v1  ;;  %4248 = vmatmul.mubr.msk.f32.gmra.mrb[72].mxu0 %vm676_vm6, %v4884_v56 }
 0x1f0   :  { %4103 = vmatprep.mubr.msk.f32.mxu1 %vm676_vm6, %v4931_v4  ;;  %4250 = vmatprep.mubr.msk.f32.mxu0 %vm676_vm6, %v4894_v59 }
 0x1f3   :  { %4104 = vmatmul.mubr.msk.f32.gmra.mrb[36].mxu1 %vm676_vm6, %v4927_v3  ;;  %4251 = vmatmul.mubr.msk.f32.gmra.mrb[74].mxu0 %vm676_vm6, %v4892_v58 }
 0x1f4   :  { %4106 = vmatprep.mubr.msk.f32.mxu1 %vm676_vm6, %v4943_v6  ;;  %4253 = vmatprep.mubr.msk.f32.mxu0 %vm676_vm6, %v4904_v63 }
 0x1f7   :  { %4107 = vmatmul.mubr.msk.f32.gmra.mrb[38].mxu1 %vm676_vm6, %v4939_v5  ;;  %4254 = vmatmul.mubr.msk.f32.gmra.mrb[76].mxu0 %vm676_vm6, %v4900_v62 }
 0x1f8   :  { %4109 = vmatprep.mubr.msk.f32.mxu1 %vm676_vm6, %v4955_v8  ;;  %4256 = vmatprep.mubr.msk.f32.mxu0 %vm676_vm6, %v4918_v2 }
 0x1fb   :  { %4110 = vmatmul.mubr.msk.f32.gmra.mrb[40].mxu1 %vm676_vm6, %v4951_v7  ;;  %4257 = vmatmul.mubr.msk.f32.gmra.mrb[78].mxu0 %vm676_vm6, %v4914_v1 }
 0x1fc   :  { %4112 = vmatprep.mubr.msk.f32.mxu1 %vm676_vm6, %v4967_v10  ;;  %4259 = vmatprep.mubr.msk.f32.mxu0 %vm676_vm6, %v4931_v4 }
 0x1ff   :  { %4113 = vmatmul.mubr.msk.f32.gmra.mrb[42].mxu1 %vm676_vm6, %v4963_v9  ;;  %4260 = vmatmul.mubr.msk.f32.gmra.mrb[80].mxu0 %vm676_vm6, %v4927_v3 }
 0x200   :  { %4115 = vmatprep.mubr.msk.f32.mxu1 %vm676_vm6, %v4979_v12  ;;  %4262 = vmatprep.mubr.msk.f32.mxu0 %vm676_vm6, %v4943_v6 }
 0x203   :  { %4116 = vmatmul.mubr.msk.f32.gmra.mrb[44].mxu1 %vm676_vm6, %v4975_v11  ;;  %4263 = vmatmul.mubr.msk.f32.gmra.mrb[82].mxu0 %vm676_vm6, %v4939_v5 }
 0x204   :  { %4118 = vmatprep.mubr.msk.f32.mxu1 %vm676_vm6, %v4991_v14  ;;  %4265 = vmatprep.mubr.msk.f32.mxu0 %vm676_vm6, %v4955_v8 }
 0x207   :  { %4119 = vmatmul.mubr.msk.f32.gmra.mrb[46].mxu1 %vm676_vm6, %v4987_v13  ;;  %4266 = vmatmul.mubr.msk.f32.gmra.mrb[84].mxu0 %vm676_vm6, %v4951_v7 }
 0x208   :  { %4121 = vmatprep.mubr.msk.f32.mxu1 %vm676_vm6, %v5003_v16  ;;  %4268 = vmatprep.mubr.msk.f32.mxu0 %vm676_vm6, %v4967_v10 }
 0x20b   :  { %4122 = vmatmul.mubr.msk.f32.gmra.mrb[48].mxu1 %vm676_vm6, %v4999_v15  ;;  %4269 = vmatmul.mubr.msk.f32.gmra.mrb[86].mxu0 %vm676_vm6, %v4963_v9 }
 0x20c   :  { %4124 = vmatprep.mubr.msk.f32.mxu1 %vm676_vm6, %v5015_v18  ;;  %4271 = vmatprep.mubr.msk.f32.mxu0 %vm676_vm6, %v4979_v12 }
 0x20f   :  { %4125 = vmatmul.mubr.msk.f32.gmra.mrb[50].mxu1 %vm676_vm6, %v5011_v17  ;;  %4272 = vmatmul.mubr.msk.f32.gmra.mrb[88].mxu0 %vm676_vm6, %v4975_v11 }
 0x210   :  { %4127 = vmatprep.mubr.msk.f32.mxu1 %vm676_vm6, %v5027_v20  ;;  %4274 = vmatprep.mubr.msk.f32.mxu0 %vm676_vm6, %v4991_v14 }
 0x213   :  { %4128 = vmatmul.mubr.msk.f32.gmra.mrb[52].mxu1 %vm676_vm6, %v5023_v19  ;;  %4275 = vmatmul.mubr.msk.f32.gmra.mrb[90].mxu0 %vm676_vm6, %v4987_v13 }
 0x214   :  { %4130 = vmatprep.mubr.msk.f32.mxu1 %vm676_vm6, %v5039_v22  ;;  %4277 = vmatprep.mubr.msk.f32.mxu0 %vm676_vm6, %v5003_v16 }
 0x217   :  { %4131 = vmatmul.mubr.msk.f32.gmra.mrb[54].mxu1 %vm676_vm6, %v5035_v21  ;;  %4278 = vmatmul.mubr.msk.f32.gmra.mrb[92].mxu0 %vm676_vm6, %v4999_v15 }
 0x218   :  { %4133 = vmatprep.mubr.msk.f32.mxu1 %vm676_vm6, %v5051_v24  ;;  %4280 = vmatprep.mubr.msk.f32.mxu0 %vm676_vm6, %v5015_v18 }
 0x21b   :  { %4134 = vmatmul.mubr.msk.f32.gmra.mrb[56].mxu1 %vm676_vm6, %v5047_v23  ;;  %4281 = vmatmul.mubr.msk.f32.gmra.mrb[94].mxu0 %vm676_vm6, %v5011_v17 }
 0x21c   :  { %4192 = vmatprep.mubr.msk.f32.mxu1 %vm676_vm6, %v4878_v46  ;;  %4283 = vmatprep.mubr.msk.f32.mxu0 %vm676_vm6, %v5027_v20 }
 0x21f   :  { %4193 = vmatmul.mubr.msk.f32.vlgmr.msra.gmra.mrb[58].mxu1 %vm676_vm6, %v4876_v54  ;;  %4284 = vmatmul.mubr.msk.f32.gmra.mrb[96].mxu0 %vm676_vm6, %v5023_v19 }
 0x220   :  { %4434 = vmatpush3.bf16.msra.mxu1 %v5063_v27  ;;  %4195 = vmatprep.mubr.msk.f32.mxu1 %vm676_vm6, %v4886_v57 }
 0x221   :  { %4286 = vmatprep.mubr.msk.f32.mxu0 %vm676_vm6, %v5039_v22 }
 0x223   :  { %4196 = vmatmul.mubr.msk.f32.gmra.mrb[60].mxu1 %vm676_vm6, %v4884_v56  ;;  %4287 = vmatmul.mubr.msk.f32.gmra.mrb[98].mxu0 %vm676_vm6, %v5035_v21 }
 0x224   :  { %4198 = vmatprep.mubr.msk.f32.mxu1 %vm676_vm6, %v4894_v59  ;;  %4289 = vmatprep.mubr.msk.f32.mxu0 %vm676_vm6, %v5051_v24 }
 0x227   :  { %4199 = vmatmul.mubr.msk.f32.gmra.mrb[62].mxu1 %vm676_vm6, %v4892_v58  ;;  %4290 = vmatmul.mubr.msk.f32.gmra.mrb[100].mxu0 %vm676_vm6, %v5047_v23 }
 0x228   :  { %4201 = vmatprep.mubr.msk.f32.mxu1 %vm676_vm6, %v4904_v63 }
 0x22b   :  { %4202 = vmatmul.mubr.msk.f32.gmra.mrb[64].mxu1 %vm676_vm6, %v4900_v62 }
 0x22c   :  { %4204 = vmatprep.mubr.msk.f32.mxu1 %vm676_vm6, %v4918_v2 }
 0x22f   :  { %4205 = vmatmul.mubr.msk.f32.gmra.mrb[66].mxu1 %vm676_vm6, %v4914_v1 }
 0x230   :  { %4207 = vmatprep.mubr.msk.f32.mxu1 %vm676_vm6, %v4931_v4 }
 0x233   :  { %4208 = vmatmul.mubr.msk.f32.gmra.mrb[68].mxu1 %vm676_vm6, %v4927_v3 }
 0x234   :  { %4210 = vmatprep.mubr.msk.f32.mxu1 %vm676_vm6, %v4943_v6 }
 0x237   :  { %4211 = vmatmul.mubr.msk.f32.gmra.mrb[70].mxu1 %vm676_vm6, %v4939_v5 }
 0x238   :  { %4213 = vmatprep.mubr.msk.f32.mxu1 %vm676_vm6, %v4955_v8 }
 0x23b   :  { %4214 = vmatmul.mubr.msk.f32.gmra.mrb[72].mxu1 %vm676_vm6, %v4951_v7 }
 0x23c   :  { %4216 = vmatprep.mubr.msk.f32.mxu1 %vm676_vm6, %v4967_v10 }
 0x23f   :  { %4217 = vmatmul.mubr.msk.f32.gmra.mrb[74].mxu1 %vm676_vm6, %v4963_v9 }
 0x240   :  { %4219 = vmatprep.mubr.msk.f32.mxu1 %vm676_vm6, %v4979_v12 }
 0x243   :  { %4220 = vmatmul.mubr.msk.f32.gmra.mrb[76].mxu1 %vm676_vm6, %v4975_v11 }
 0x244   :  { %4222 = vmatprep.mubr.msk.f32.mxu1 %vm676_vm6, %v4991_v14 }
 0x247   :  { %4223 = vmatmul.mubr.msk.f32.gmra.mrb[78].mxu1 %vm676_vm6, %v4987_v13 }
 0x248   :  { %4225 = vmatprep.mubr.msk.f32.mxu1 %vm676_vm6, %v5003_v16 }
 0x24b   :  { %4226 = vmatmul.mubr.msk.f32.gmra.mrb[80].mxu1 %vm676_vm6, %v4999_v15 }
 0x24c   :  { %4228 = vmatprep.mubr.msk.f32.mxu1 %vm676_vm6, %v5015_v18 }
 0x24f   :  { %4229 = vmatmul.mubr.msk.f32.gmra.mrb[82].mxu1 %vm676_vm6, %v5011_v17 }
 0x250   :  { %4231 = vmatprep.mubr.msk.f32.mxu1 %vm676_vm6, %v5027_v20 }
 0x253   :  { %4232 = vmatmul.mubr.msk.f32.gmra.mrb[84].mxu1 %vm676_vm6, %v5023_v19 }
 0x254   :  { %4234 = vmatprep.mubr.msk.f32.mxu1 %vm676_vm6, %v5039_v22 }
 0x257   :  { %4235 = vmatmul.mubr.msk.f32.gmra.mrb[86].mxu1 %vm676_vm6, %v5035_v21 }
 0x258   :  { %4237 = vmatprep.mubr.msk.f32.mxu1 %vm676_vm6, %v5051_v24 }
 0x25b   :  { %4238 = vmatmul.mubr.msk.f32.gmra.mrb[88].mxu1 %vm676_vm6, %v5047_v23 }
 0x25c   :  { %4296 = vmatprep.mubr.msk.f32.mxu1 %vm676_vm6, %v4878_v46 }
 0x25f   :  { %4297 = vmatmul.mubr.msk.f32.vlgmr.msra.gmra.mrb[90].mxu1 %vm676_vm6, %v4876_v54 }
 0x260   :  { %4299 = vmatprep.mubr.msk.f32.mxu1 %vm676_vm6, %v4886_v57 }
 0x263   :  { %4300 = vmatmul.mubr.msk.f32.gmra.mrb[92].mxu1 %vm676_vm6, %v4884_v56 }
 0x264   :  { %4302 = vmatprep.mubr.msk.f32.mxu1 %vm676_vm6, %v4894_v59 }
 0x267   :  { %4303 = vmatmul.mubr.msk.f32.gmra.mrb[94].mxu1 %vm676_vm6, %v4892_v58 }
 0x268   :  { %4305 = vmatprep.mubr.msk.f32.mxu1 %vm676_vm6, %v4904_v63 }
 0x26b   :  { %4306 = vmatmul.mubr.msk.f32.gmra.mrb[96].mxu1 %vm676_vm6, %v4900_v62 }
 0x26c   :  { %4308 = vmatprep.mubr.msk.f32.mxu1 %vm676_vm6, %v4918_v2 }
 0x26f   :  { %4309 = vmatmul.mubr.msk.f32.gmra.mrb[98].mxu1 %vm676_vm6, %v4914_v1 }
 0x270   :  { %4311 = vmatprep.mubr.msk.f32.mxu1 %vm676_vm6, %v4931_v4 }
 0x272   :  { %v4038_v28 = vpop.f32.mrb[32].mxu0 }
 0x273   :  { %v999_v29 = vsel %vm676_vm6, %v4038_v28, -inf  ;;  %v839_v30 = vpop.f32.mrb[33].mxu0  ;;  %4312 = vmatmul.mubr.msk.f32.gmra.mrb[100].mxu1 %vm676_vm6, %v4927_v3 }
 0x274   :  { %v998_v31 = vsel %vm676_vm6, %v839_v30, -inf  ;;  %4314 = vmatprep.mubr.msk.f32.mxu1 %vm676_vm6, %v4943_v6 }
 0x275   :  { %v1000_v32 = vmax.f32 %v998_v31, %v999_v29 }
 0x276   :  { %v4041_v33 = vpop.f32.mrb[34].mxu0 }
 0x277   :  { %v1001_v34 = vrot.slane %v1000_v32, 4  ;;  %v1008_v35 = vsel %vm676_vm6, %v4041_v33, -inf  ;;  %v849_v36 = vpop.f32.mrb[35].mxu0  ;;  %4315 = vmatmul.mubr.msk.f32.gmra.mrb[102].mxu1 %vm676_vm6, %v4939_v5 }
 0x278   :  { %v1007_v37 = vsel %vm676_vm6, %v849_v36, -inf  ;;  %4317 = vmatprep.mubr.msk.f32.mxu1 %vm676_vm6, %v4955_v8 }
 0x279   :  { %v1002_v38 = vmax.f32 %v1000_v32, %v1001_v34  ;;  %v1009_v39 = vmax.f32 %v1007_v37, %v1008_v35 }
 0x27a   :  { %v4044_v40 = vpop.f32.mrb[36].mxu0 }
 0x27b   :  { %v1003_v41 = vrot.slane %v1002_v38, 2  ;;  %v1010_v42 = vrot.slane %v1009_v39, 4  ;;  %v1017_v44 = vsel %vm676_vm6, %v4044_v40, -inf  ;;  %v859_v45 = vpop.f32.mrb[37].mxu0  ;;  %4318 = vmatmul.mubr.msk.f32.gmra.mrb[104].mxu1 %vm676_vm6, %v4951_v7 }
 0x27c   :  { %v1016_v47 = vsel %vm676_vm6, %v859_v45, -inf  ;;  %4320 = vmatprep.mubr.msk.f32.mxu1 %vm676_vm6, %v4967_v10 }
 0x27d   :  { %v1004_v48 = vmax.f32 %v1002_v38, %v1003_v41  ;;  %v1011_v49 = vmax.f32 %v1009_v39, %v1010_v42  ;;  %v1018_v50 = vmax.f32 %v1016_v47, %v1017_v44 }
 0x27e   :  { %v4047_v51 = vpop.f32.mrb[0].mxu1  ;;  %v5308_v52 = vpop.f32.mrb[38].mxu0 }
 0x27f   :  { %v1012_v53 = vrot.slane %v1011_v49, 2  ;;  %v1019_v43 = vrot.slane %v1018_v50, 4  ;;  %v1026_v54 = vsel %vm676_vm6, %v4047_v51, -inf  ;;  %v869_v46 = vpop.f32.mrb[1].mxu1  ;;  %v1438_v55 = vpop.f32.mrb[39].mxu0  ;;  %4321 = vmatmul.mubr.msk.f32.gmra.mrb[106].mxu1 %vm676_vm6, %v4963_v9  ;;  %v1005_v56 = vrot.slane %v1004_v48, 1 }
 0x280   :  { %v1631_v57 = vrot.slane %v5308_v52, 1  ;;  %v1025_v58 = vsel %vm676_vm6, %v869_v46, -inf  ;;  %v1630_v59 = vrot.slane %v1438_v55, 1  ;;  %4323 = vmatprep.mubr.msk.f32.mxu1 %vm676_vm6, %v4979_v12 }
 0x281   :  { %v1013_v60 = vmax.f32 %v1011_v49, %v1012_v53  ;;  %v1020_v61 = vmax.f32 %v1018_v50, %v1019_v43  ;;  %v1027_v62 = vmax.f32 %v1025_v58, %v1026_v54  ;;  %v1006_v8 = vmax.f32 %v1004_v48, %v1005_v56 }
 0x282   :  { %v4050_v63 = vpop.f32.mrb[2].mxu1  ;;  %v5317_v0 = vpop.f32.mrb[40].mxu0  ;;  %v5322_v1 = vsel %vm1629_vm3, %v1630_v59, %v1631_v57 }
 0x283   :  { %v1014_v2 = vrot.slane %v1013_v60, 1  ;;  %v1021_v3 = vrot.slane %v1020_v61, 2  ;;  %v1028_v4 = vrot.slane %v1027_v62, 4  ;;  %v1035_v5 = vsel %vm676_vm6, %v4050_v63, -inf  ;;  %v879_v6 = vpop.f32.mrb[3].mxu1  ;;  %v1448_v7 = vpop.f32.mrb[41].mxu0  ;;  %4324 = vmatmul.mubr.msk.f32.gmra.mrb[108].mxu1 %vm676_vm6, %v4975_v11 }
 0x284   :  { %v1634_v9 = vrot.slane %v5317_v0, 1  ;;  %v1034_v10 = vsel %vm676_vm6, %v879_v6, -inf  ;;  %v1633_v12 = vrot.slane %v1448_v7, 1  ;;  %4326 = vmatprep.mubr.msk.f32.mxu1 %vm676_vm6, %v4991_v14 }
 0x285   :  { %v1015_v25 = vmax.f32 %v1013_v60, %v1014_v2  ;;  %v1022_v26 = vmax.f32 %v1020_v61, %v1021_v3  ;;  %v1029_v27 = vmax.f32 %v1027_v62, %v1028_v4  ;;  %v1036_v28 = vmax.f32 %v1034_v10, %v1035_v5 }
 0x286   :  { %v4053_v29 = vpop.f32.mrb[4].mxu1  ;;  %v5331_v30 = vpop.f32.mrb[42].mxu0  ;;  %v5336_v11 = vsel %vm1629_vm3, %v1633_v12, %v1634_v9 }
 0x287   :  { %v3022_v31 = vsel %vm3021_vm7, %v1015_v25, %v1006_v8  ;;  %v1023_v32 = vrot.slane %v1022_v26, 1  ;;  %v1030_v33 = vrot.slane %v1029_v27, 2  ;;  %v1037_v34 = vrot.slane %v1036_v28, 4  ;;  %v889_v35 = vpop.f32.mrb[5].mxu1  ;;  %v1458_v14 = vpop.f32.mrb[43].mxu0  ;;  %4327 = vmatmul.mubr.msk.f32.gmra.mrb[110].mxu1 %vm676_vm6, %v4987_v13 }
 0x288   :  { %v1044_v36 = vsel %vm676_vm6, %v4053_v29, -inf  ;;  %v1637_v37 = vrot.slane %v5331_v30, 1  ;;  %v1043_v38 = vsel %vm676_vm6, %v889_v35, -inf  ;;  %v1636_v39 = vrot.slane %v1458_v14, 1  ;;  %4329 = vmatprep.mubr.msk.f32.mxu1 %vm676_vm6, %v5003_v16 }
 0x289   :  { %v1024_v40 = vmax.f32 %v1022_v26, %v1023_v32  ;;  %v1031_v41 = vmax.f32 %v1029_v27, %v1030_v33  ;;  %v1038_v42 = vmax.f32 %v1036_v28, %v1037_v34  ;;  %v1045_v44 = vmax.f32 %v1043_v38, %v1044_v36 }
 0x28a   :  { %v4056_v45 = vpop.f32.mrb[6].mxu1  ;;  %v5346_v47 = vpop.f32.mrb[44].mxu0  ;;  %v5351_v13 = vsel %vm1629_vm3, %v1636_v39, %v1637_v37 }
 0x28b   :  { %v3024_v48 = vsel %vm3023_vm8, %v1024_v40, %v3022_v31  ;;  %v1032_v49 = vrot.slane %v1031_v41, 1  ;;  %v1039_v50 = vrot.slane %v1038_v42, 2  ;;  %v1046_v51 = vrot.slane %v1045_v44, 4  ;;  %v899_v53 = vpop.f32.mrb[7].mxu1  ;;  %v1468_v16 = vpop.f32.mrb[45].mxu0  ;;  %4330 = vmatmul.mubr.msk.f32.gmra.mrb[112].mxu1 %vm676_vm6, %v4999_v15 }
 0x28c   :  { %v1053_v43 = vsel %vm676_vm6, %v4056_v45, -inf  ;;  %v1640_v54 = vrot.slane %v5346_v47, 1  ;;  %v1052_v46 = vsel %vm676_vm6, %v899_v53, -inf  ;;  %v1639_v55 = vrot.slane %v1468_v16, 1  ;;  %4332 = vmatprep.mubr.msk.f32.mxu1 %vm676_vm6, %v5015_v18 }
 0x28d   :  { %v1033_v56 = vmax.f32 %v1031_v41, %v1032_v49  ;;  %v1040_v58 = vmax.f32 %v1038_v42, %v1039_v50  ;;  %v1047_v59 = vmax.f32 %v1045_v44, %v1046_v51  ;;  %v1054_v60 = vmax.f32 %v1052_v46, %v1053_v43 }
 0x28e   :  { %v4059_v61 = vpop.f32.mrb[8].mxu1  ;;  %v5361_v62 = vpop.f32.mrb[46].mxu0  ;;  %v5366_v15 = vsel %vm1629_vm3, %v1639_v55, %v1640_v54 }
 0x28f   :  { %v3026_v63 = vsel %vm3025_vm9, %v1033_v56, %v3024_v48  ;;  %v1041_v2 = vrot.slane %v1040_v58, 1  ;;  %v1048_v3 = vrot.slane %v1047_v59, 2  ;;  %v1055_v4 = vrot.slane %v1054_v60, 4  ;;  %v909_v5 = vpop.f32.mrb[9].mxu1  ;;  %v1478_v18 = vpop.f32.mrb[47].mxu0  ;;  %4333 = vmatmul.mubr.msk.f32.gmra.mrb[114].mxu1 %vm676_vm6, %v5011_v17 }
 0x290   :  { %v1062_v6 = vsel %vm676_vm6, %v4059_v61, -inf  ;;  %v1643_v7 = vrot.slane %v5361_v62, 1  ;;  %v1061_v8 = vsel %vm676_vm6, %v909_v5, -inf  ;;  %v1642_v10 = vrot.slane %v1478_v18, 1  ;;  %4335 = vmatprep.mubr.msk.f32.mxu1 %vm676_vm6, %v5027_v20 }
 0x291   :  { %v1042_v12 = vmax.f32 %v1040_v58, %v1041_v2  ;;  %v1049_v25 = vmax.f32 %v1047_v59, %v1048_v3  ;;  %v1056_v26 = vmax.f32 %v1054_v60, %v1055_v4  ;;  %v1063_v27 = vmax.f32 %v1061_v8, %v1062_v6 }
 0x292   :  { %v4062_v28 = vpop.f32.mrb[10].mxu1  ;;  %v5376_v29 = vpop.f32.mrb[48].mxu0  ;;  %v5381_v17 = vsel %vm1629_vm3, %v1642_v10, %v1643_v7 }
 0x293   :  { %v1050_v31 = vrot.slane %v1049_v25, 1  ;;  %v1057_v32 = vrot.slane %v1056_v26, 2  ;;  %v1064_v33 = vrot.slane %v1063_v27, 4  ;;  %v1071_v34 = vsel %vm676_vm6, %v4062_v28, -inf  ;;  %v919_v35 = vpop.f32.mrb[11].mxu1  ;;  %v1488_v20 = vpop.f32.mrb[49].mxu0  ;;  %4336 = vmatmul.mubr.msk.f32.gmra.mrb[116].mxu1 %vm676_vm6, %v5023_v19 }
 0x294   :  { %v1646_v14 = vrot.slane %v5376_v29, 1  ;;  %v1070_v36 = vsel %vm676_vm6, %v919_v35, -inf  ;;  %v1645_v38 = vrot.slane %v1488_v20, 1  ;;  %4338 = vmatprep.mubr.msk.f32.mxu1 %vm676_vm6, %v5039_v22  ;;  %v3028_v39 = vsel %vm3027_vm10, %v1042_v12, %v3026_v63 }
 0x295   :  { %v1051_v40 = vmax.f32 %v1049_v25, %v1050_v31  ;;  %v1058_v41 = vmax.f32 %v1056_v26, %v1057_v32  ;;  %v1065_v42 = vmax.f32 %v1063_v27, %v1064_v33  ;;  %v1072_v44 = vmax.f32 %v1070_v36, %v1071_v34 }
 0x296   :  { %v4065_v45 = vpop.f32.mrb[12].mxu1  ;;  %v5391_v48 = vpop.f32.mrb[50].mxu0  ;;  %v5396_v19 = vsel %vm1629_vm3, %v1645_v38, %v1646_v14 }
 0x297   :  { %v1059_v49 = vrot.slane %v1058_v41, 1  ;;  %v1066_v50 = vrot.slane %v1065_v42, 2  ;;  %v1073_v51 = vrot.slane %v1072_v44, 4  ;;  %v1080_v22 = vsel %vm676_vm6, %v4065_v45, -inf  ;;  %v929_v53 = vpop.f32.mrb[13].mxu1  ;;  %v1498_v16 = vpop.f32.mrb[51].mxu0  ;;  %4339 = vmatmul.mubr.msk.f32.gmra.mrb[118].mxu1 %vm676_vm6, %v5035_v21 }
 0x298   :  { %v1649_v43 = vrot.slane %v5391_v48, 1  ;;  %v1079_v46 = vsel %vm676_vm6, %v929_v53, -inf  ;;  %v1648_v55 = vrot.slane %v1498_v16, 1  ;;  %4341 = vmatprep.mubr.msk.f32.mxu1 %vm676_vm6, %v5051_v24  ;;  %v3030_v56 = vsel %vm3029_vm11, %v1051_v40, %v3028_v39 }
 0x299   :  { %v1060_v58 = vmax.f32 %v1058_v41, %v1059_v49  ;;  %v1067_v59 = vmax.f32 %v1065_v42, %v1066_v50  ;;  %v1074_v60 = vmax.f32 %v1072_v44, %v1073_v51  ;;  %v1081_v61 = vmax.f32 %v1079_v46, %v1080_v22 }
 0x29a   :  { %v4068_v63 = vpop.f32.mrb[14].mxu1  ;;  %v5406_v2 = vpop.f32.mrb[52].mxu0  ;;  %v5411_v21 = vsel %vm1629_vm3, %v1648_v55, %v1649_v43 }
 0x29b   :  { %v1068_v3 = vrot.slane %v1067_v59, 1  ;;  %v1075_v4 = vrot.slane %v1074_v60, 2  ;;  %v1082_v5 = vrot.slane %v1081_v61, 4  ;;  %v1089_v24 = vsel %vm676_vm6, %v4068_v63, -inf  ;;  %v939_v18 = vpop.f32.mrb[15].mxu1  ;;  %v1508_v6 = vpop.f32.mrb[53].mxu0  ;;  %4342 = vmatmul.mubr.msk.f32.gmra.mrb[120].mxu1 %vm676_vm6, %v5047_v23 }
 0x29c   :  { %v1652_v8 = vrot.slane %v5406_v2, 1  ;;  %v1088_v10 = vsel %vm676_vm6, %v939_v18, -inf  ;;  %v1651_v12 = vrot.slane %v1508_v6, 1  ;;  %v3032_v25 = vsel %vm3031_vm12, %v1060_v58, %v3030_v56 }
 0x29d   :  { %v1069_v26 = vmax.f32 %v1067_v59, %v1068_v3  ;;  %v1076_v27 = vmax.f32 %v1074_v60, %v1075_v4  ;;  %v1083_v28 = vmax.f32 %v1081_v61, %v1082_v5  ;;  %v1090_v31 = vmax.f32 %v1088_v10, %v1089_v24 }
 0x29e   :  { %v4071_v32 = vpop.f32.mrb[16].mxu1  ;;  %v5419_v33 = vpop.f32.mrb[54].mxu0  ;;  %v5424_v34 = vsel %vm1629_vm3, %v1651_v12, %v1652_v8 }
 0x29f   :  { %v1077_v23 = vrot.slane %v1076_v27, 1  ;;  %v1084_v35 = vrot.slane %v1083_v28, 2  ;;  %v1091_v20 = vrot.slane %v1090_v31, 4  ;;  %v1098_v36 = vsel %vm676_vm6, %v4071_v32, -inf  ;;  %v949_v38 = vpop.f32.mrb[17].mxu1  ;;  %v1518_v39 = vpop.f32.mrb[55].mxu0 }
 0x2a0   :  { %v1655_v40 = vrot.slane %v5419_v33, 1  ;;  %v1097_v41 = vsel %vm676_vm6, %v949_v38, -inf  ;;  %v1654_v42 = vrot.slane %v1518_v39, 1  ;;  %v5430_v44 = vsel %vm3033_vm13, %v1069_v26, %v3032_v25 }
 0x2a1   :  { %v1085_v45 = vmax.f32 %v1083_v28, %v1084_v35  ;;  %v1092_v49 = vmax.f32 %v1090_v31, %v1091_v20  ;;  %v1099_v50 = vmax.f32 %v1097_v41, %v1098_v36  ;;  %v1078_v60 = vmax.f32 %v1076_v27, %v1077_v23 }
 0x2a2   :  { %v4074_v51 = vpop.f32.mrb[18].mxu1  ;;  %v5432_v22 = vpop.f32.mrb[56].mxu0  ;;  %v5437_v53 = vsel %vm1629_vm3, %v1654_v42, %v1655_v40 }
 0x2a3   :  { %v1086_v16 = vrot.slane %v1085_v45, 1  ;;  %v1093_v46 = vrot.slane %v1092_v49, 2  ;;  %v1100_v55 = vrot.slane %v1099_v50, 4  ;;  %v1107_v56 = vsel %vm676_vm6, %v4074_v51, -inf  ;;  %v959_v58 = vpop.f32.mrb[19].mxu1  ;;  %v1528_v59 = vpop.f32.mrb[57].mxu0 }
 0x2a4   :  { %v1658_v61 = vrot.slane %v5432_v22, 1  ;;  %v1106_v63 = vsel %vm676_vm6, %v959_v58, -inf  ;;  %v1657_v3 = vrot.slane %v1528_v59, 1 }
 0x2a5   :  { %v1087_v4 = vmax.f32 %v1085_v45, %v1086_v16  ;;  %v1094_v5 = vmax.f32 %v1092_v49, %v1093_v46  ;;  %v1101_v24 = vmax.f32 %v1099_v50, %v1100_v55  ;;  %v1108_v18 = vmax.f32 %v1106_v63, %v1107_v56 }
 0x2a6   :  { %v4077_v6 = vpop.f32.mrb[20].mxu1  ;;  %v5442_v10 = vpop.f32.mrb[58].mxu0  ;;  %v5447_v12 = vsel %vm1629_vm3, %v1657_v3, %v1658_v61 }
 0x2a7   :  { %v3035_v25 = vsel %vm3021_vm7, %v1087_v4, %v1078_v60  ;;  %v1095_v26 = vrot.slane %v1094_v5, 1  ;;  %v1102_v27 = vrot.slane %v1101_v24, 2  ;;  %v1109_v28 = vrot.slane %v1108_v18, 4  ;;  %v969_v31 = vpop.f32.mrb[21].mxu1  ;;  %v1538_v32 = vpop.f32.mrb[59].mxu0 }
 0x2a8   :  { %v1116_v23 = vsel %vm676_vm6, %v4077_v6, -inf  ;;  %v1661_v35 = vrot.slane %v5442_v10, 1  ;;  %v1115_v20 = vsel %vm676_vm6, %v969_v31, -inf  ;;  %v1660_v36 = vrot.slane %v1538_v32, 1 }
 0x2a9   :  { %v1096_v38 = vmax.f32 %v1094_v5, %v1095_v26  ;;  %v1103_v39 = vmax.f32 %v1101_v24, %v1102_v27  ;;  %v1110_v41 = vmax.f32 %v1108_v18, %v1109_v28  ;;  %v1117_v42 = vmax.f32 %v1115_v20, %v1116_v23 }
 0x2aa   :  { %v4080_v45 = vpop.f32.mrb[22].mxu1  ;;  %v5453_v49 = vpop.f32.mrb[60].mxu0  ;;  %v5458_v50 = vsel %vm1629_vm3, %v1660_v36, %v1661_v35 }
 0x2ab   :  { %v3036_v51 = vsel %vm3023_vm8, %v1096_v38, %v3035_v25  ;;  %v1104_v16 = vrot.slane %v1103_v39, 1  ;;  %v1111_v46 = vrot.slane %v1110_v41, 2  ;;  %v1118_v55 = vrot.slane %v1117_v42, 4  ;;  %v979_v56 = vpop.f32.mrb[23].mxu1  ;;  %v1548_v58 = vpop.f32.mrb[61].mxu0 }
 0x2ac   :  { %v1125_v59 = vsel %vm676_vm6, %v4080_v45, -inf  ;;  %v1664_v60 = vrot.slane %v5453_v49, 1  ;;  %v1124_v63 = vsel %vm676_vm6, %v979_v56, -inf  ;;  %v1663_v3 = vrot.slane %v1548_v58, 1 }
 0x2ad   :  { %v1105_v4 = vmax.f32 %v1103_v39, %v1104_v16  ;;  %v1112_v5 = vmax.f32 %v1110_v41, %v1111_v46  ;;  %v1119_v24 = vmax.f32 %v1117_v42, %v1118_v55  ;;  %v1126_v18 = vmax.f32 %v1124_v63, %v1125_v59 }
 0x2ae   :  { %v4083_v6 = vpop.f32.mrb[24].mxu1  ;;  %v5464_v26 = vpop.f32.mrb[62].mxu0  ;;  %v5469_v25 = vsel %vm1629_vm3, %v1663_v3, %v1664_v60 }
 0x2af   :  { %v3037_v27 = vsel %vm3025_vm9, %v1105_v4, %v3036_v51  ;;  %v1113_v28 = vrot.slane %v1112_v5, 1  ;;  %v1120_v31 = vrot.slane %v1119_v24, 2  ;;  %v1127_v32 = vrot.slane %v1126_v18, 4  ;;  %v989_v23 = vpop.f32.mrb[25].mxu1  ;;  %v1558_v20 = vpop.f32.mrb[63].mxu0 }
 0x2b0   :  { %v1134_v36 = vsel %vm676_vm6, %v4083_v6, -inf  ;;  %v1667_v38 = vrot.slane %v5464_v26, 1  ;;  %v1133_v39 = vsel %vm676_vm6, %v989_v23, -inf  ;;  %v1666_v41 = vrot.slane %v1558_v20, 1 }
 0x2b1   :  { %v1114_v42 = vmax.f32 %v1112_v5, %v1113_v28  ;;  %v1121_v45 = vmax.f32 %v1119_v24, %v1120_v31  ;;  %v1128_v16 = vmax.f32 %v1126_v18, %v1127_v32  ;;  %v1135_v46 = vmax.f32 %v1133_v39, %v1134_v36 }
 0x2b2   :  { %v4090_v55 = vpop.f32.mrb[26].mxu1  ;;  %v5475_v56 = vpop.f32.mrb[64].mxu0  ;;  %v5480_v51 = vsel %vm1629_vm3, %v1666_v41, %v1667_v38 }
 0x2b3   :  { %v1122_v58 = vrot.slane %v1121_v45, 1  ;;  %v1129_v59 = vrot.slane %v1128_v16, 2  ;;  %v1136_v63 = vrot.slane %v1135_v46, 4  ;;  %v1711_v3 = vadd.f32 %v4090_v55, %v1631_v57  ;;  %v1210_v4 = vpop.f32.mrb[27].mxu1  ;;  %v1568_v5 = vpop.f32.mrb[65].mxu0 }
 0x2b4   :  { %v1670_v24 = vrot.slane %v5475_v56, 1  ;;  %v1710_v18 = vadd.f32 %v5322_v1, %v1210_v4  ;;  %v1669_v6 = vrot.slane %v1568_v5, 1  ;;  %v3038_v28 = vsel %vm3027_vm10, %v1114_v42, %v3037_v27 }
 0x2b5   :  { %v1130_v31 = vmax.f32 %v1128_v16, %v1129_v59  ;;  %v1137_v32 = vmax.f32 %v1135_v46, %v1136_v63  ;;  %v1744_v23 = vsel %vm1743_vm14, %v1711_v3, -inf  ;;  %v1123_v20 = vmax.f32 %v1121_v45, %v1122_v58 }
 0x2b6   :  { %v1742_v36 = vsel %vm676_vm6, %v1710_v18, -inf  ;;  %v4093_v39 = vpop.f32.mrb[28].mxu1  ;;  %v5489_v41 = vpop.f32.mrb[66].mxu0  ;;  %v5494_v52 = vsel %vm1629_vm3, %v1669_v6, %v1670_v24 }
 0x2b7   :  { %v1131_v57 = vrot.slane %v1130_v31, 1  ;;  %v1138_v1 = vrot.slane %v1137_v32, 2  ;;  %v1745_v55 = vmax.f32 %v1742_v36, %v1744_v23  ;;  %v1713_v27 = vadd.f32 %v4093_v39, %v1634_v9  ;;  %v1220_v42 = vpop.f32.mrb[29].mxu1  ;;  %v1578_v16 = vpop.f32.mrb[67].mxu0 }
 0x2b8   :  { %v1673_v45 = vrot.slane %v5489_v41, 1  ;;  %v1712_v46 = vadd.f32 %v5336_v11, %v1220_v42  ;;  %v1672_v58 = vrot.slane %v1578_v16, 1  ;;  %v3039_v9 = vsel %vm3029_vm11, %v1123_v20, %v3038_v28 }
 0x2b9   :  { %v1132_v59 = vmax.f32 %v1130_v31, %v1131_v57  ;;  %v1139_v63 = vmax.f32 %v1137_v32, %v1138_v1  ;;  %v1746_v3 = vrot.slane %v1745_v55, 4  ;;  %v1753_v4 = vsel %vm1743_vm14, %v1713_v27, -inf }
 0x2ba   :  { %v1752_v5 = vsel %vm676_vm6, %v1712_v46, -inf  ;;  %v4096_v18 = vpop.f32.mrb[30].mxu1  ;;  %v5502_v6 = vpop.f32.mrb[68].mxu0  ;;  %v5507_v0 = vsel %vm1629_vm3, %v1672_v58, %v1673_v45 }
 0x2bb   :  { %v1140_v23 = vrot.slane %v1139_v63, 1  ;;  %v1747_v11 = vmax.f32 %v1745_v55, %v1746_v3  ;;  %v1754_v36 = vmax.f32 %v1752_v5, %v1753_v4  ;;  %v1715_v31 = vadd.f32 %v4096_v18, %v1637_v37  ;;  %v1230_v32 = vpop.f32.mrb[31].mxu1  ;;  %v1588_v39 = vpop.f32.mrb[69].mxu0 }
 0x2bc   :  { %v6054_v57 = vrot.slane %v5502_v6, 1  ;;  %v1714_v1 = vadd.f32 %v5351_v13, %v1230_v32  ;;  %v1675_v27 = vrot.slane %v1588_v39, 1  ;;  %v3040_v42 = vsel %vm3031_vm12, %v1132_v59, %v3039_v9 }
 0x2bd   :  { %v1141_v16 = vmax.f32 %v1139_v63, %v1140_v23  ;;  %v1748_v46 = vrot.slane %v1747_v11, 2  ;;  %v1755_v58 = vrot.slane %v1754_v36, 4  ;;  %v1762_v28 = vsel %vm1743_vm14, %v1715_v31, -inf }
 0x2be   :  { %v1761_v20 = vsel %vm676_vm6, %v1714_v1, -inf  ;;  %v4099_v55 = vpop.f32.mrb[32].mxu1  ;;  %v5517_v3 = vpop.f32.mrb[70].mxu0  ;;  %v5522_v30 = vsel %vm1629_vm3, %v1675_v27, %v6054_v57 }
 0x2bf   :  { %v1749_v37 = vmax.f32 %v1747_v11, %v1748_v46  ;;  %v1756_v13 = vmax.f32 %v1754_v36, %v1755_v58  ;;  %v1763_v4 = vmax.f32 %v1761_v20, %v1762_v28  ;;  %v1717_v59 = vadd.f32 %v4099_v55, %v1640_v54  ;;  %v1240_v63 = vpop.f32.mrb[33].mxu1  ;;  %v2183_v5 = vpop.f32.mrb[71].mxu0 }
 0x2c0   :  { %v6055_v18 = vrot.slane %v5517_v3, 1  ;;  %v1716_v9 = vadd.f32 %v5366_v15, %v1240_v63  ;;  %v2374_v23 = vrot.slane %v2183_v5, 1  ;;  %v5529_v31 = vsel %vm3033_vm13, %v1141_v16, %v3040_v42 }
 0x2c1   :  { %v1757_v32 = vrot.slane %v1756_v13, 2  ;;  %v1764_v39 = vrot.slane %v1763_v4, 4  ;;  %v1771_v1 = vsel %vm1743_vm14, %v1717_v59, -inf  ;;  %v1750_v11 = vrot.slane %v1749_v37, 1 }
 0x2c2   :  { %v1770_v36 = vsel %vm676_vm6, %v1716_v9, -inf  ;;  %v4102_v27 = vpop.f32.mrb[34].mxu1  ;;  %v5533_v47 = vpop.f32.mrb[72].mxu0  ;;  %v5538_v54 = vsel %vm1629_vm3, %v2374_v23, %v6055_v18 }
 0x2c3   :  { %v1758_v15 = vmax.f32 %v1756_v13, %v1757_v32  ;;  %v1765_v46 = vmax.f32 %v1763_v4, %v1764_v39  ;;  %v1772_v58 = vmax.f32 %v1770_v36, %v1771_v1  ;;  %v1250_v42 = vpop.f32.mrb[35].mxu1  ;;  %v2193_v16 = vpop.f32.mrb[73].mxu0  ;;  %v1719_v28 = vadd.f32 %v4102_v27, %v1643_v7 }
 0x2c4   :  { %v2378_v20 = vrot.slane %v5533_v47, 1  ;;  %v1718_v55 = vadd.f32 %v5381_v17, %v1250_v42  ;;  %v2377_v59 = vrot.slane %v2193_v16, 1  ;;  %v1751_v57 = vmax.f32 %v1749_v37, %v1750_v11 }
 0x2c5   :  { %v1759_v63 = vrot.slane %v1758_v15, 1  ;;  %v1766_v5 = vrot.slane %v1765_v46, 2  ;;  %v1773_v9 = vrot.slane %v1772_v58, 4  ;;  %v1780_v23 = vsel %vm1743_vm14, %v1719_v28, -inf }
 0x2c6   :  { %v1779_v13 = vsel %vm676_vm6, %v1718_v55, -inf  ;;  %v4105_v4 = vpop.f32.mrb[36].mxu1  ;;  %v5546_v32 = vpop.f32.mrb[74].mxu0  ;;  %v5551_v62 = vsel %vm1629_vm3, %v2377_v59, %v2378_v20 }
 0x2c7   :  { %v1760_v7 = vmax.f32 %v1758_v15, %v1759_v63  ;;  %v1767_v39 = vmax.f32 %v1765_v46, %v1766_v5  ;;  %v1774_v17 = vmax.f32 %v1772_v58, %v1773_v9  ;;  %v1781_v1 = vmax.f32 %v1779_v13, %v1780_v23  ;;  %v1260_v36 = vpop.f32.mrb[37].mxu1  ;;  %v2203_v27 = vpop.f32.mrb[75].mxu0 }
 0x2c8   :  { %v1721_v37 = vadd.f32 %v4105_v4, %v1646_v14  ;;  %v2381_v11 = vrot.slane %v5546_v32, 1  ;;  %v1720_v42 = vadd.f32 %v5396_v19, %v1260_v36  ;;  %v2380_v16 = vrot.slane %v2203_v27, 1 }
 0x2c9   :  { %v3060_v28 = vsel %vm3021_vm7, %v1760_v7, %v1751_v57  ;;  %v1768_v55 = vrot.slane %v1767_v39, 1  ;;  %v1775_v18 = vrot.slane %v1774_v17, 2  ;;  %v1782_v59 = vrot.slane %v1781_v1, 4 }
 0x2ca   :  { %v1789_v15 = vsel %vm1743_vm14, %v1721_v37, -inf  ;;  %v1788_v46 = vsel %vm676_vm6, %v1720_v42, -inf  ;;  %v4108_v58 = vpop.f32.mrb[38].mxu1  ;;  %v5560_v63 = vpop.f32.mrb[76].mxu0  ;;  %v5565_v29 = vsel %vm1629_vm3, %v2380_v16, %v2381_v11 }
 0x2cb   :  { %v1769_v14 = vmax.f32 %v1767_v39, %v1768_v55  ;;  %v1776_v19 = vmax.f32 %v1774_v17, %v1775_v18  ;;  %v1783_v5 = vmax.f32 %v1781_v1, %v1782_v59  ;;  %v1790_v9 = vmax.f32 %v1788_v46, %v1789_v15  ;;  %v1270_v57 = vpop.f32.mrb[39].mxu1  ;;  %v2213_v23 = vpop.f32.mrb[77].mxu0 }
 0x2cc   :  { %v1723_v13 = vadd.f32 %v4108_v58, %v1649_v43  ;;  %v2384_v4 = vrot.slane %v5560_v63, 1  ;;  %v1722_v7 = vadd.f32 %v5411_v21, %v1270_v57  ;;  %v2383_v36 = vrot.slane %v2213_v23, 1  ;;  %v3131_v63 = vld [vmem:[%s6048_s7] sm:$0xff] }
 0x2cd   :  { %v1777_v27 = vrot.slane %v1776_v19, 1  ;;  %v1784_v37 = vrot.slane %v1783_v5, 2  ;;  %v1791_v42 = vrot.slane %v1790_v9, 4  ;;  %v3061_v16 = vsel %vm3023_vm8, %v1769_v14, %v3060_v28 }
 0x2ce   :  { %v1798_v39 = vsel %vm1743_vm14, %v1723_v13, -inf  ;;  %v1797_v18 = vsel %vm676_vm6, %v1722_v7, -inf  ;;  %v4111_v17 = vpop.f32.mrb[40].mxu1  ;;  %v5574_v1 = vpop.f32.mrb[78].mxu0  ;;  %v5579_v48 = vsel %vm1629_vm3, %v2383_v36, %v2384_v4 }
 0x2cf   :  { %v1778_v43 = vmax.f32 %v1776_v19, %v1777_v27  ;;  %v1785_v21 = vmax.f32 %v1783_v5, %v1784_v37  ;;  %v1792_v55 = vmax.f32 %v1790_v9, %v1791_v42  ;;  %v1799_v59 = vmax.f32 %v1797_v18, %v1798_v39  ;;  %v1280_v15 = vpop.f32.mrb[41].mxu1  ;;  %v2223_v46 = vpop.f32.mrb[79].mxu0 }
 0x2d0   :  { %v1725_v28 = vadd.f32 %v4111_v17, %v1652_v8  ;;  %v2387_v58 = vrot.slane %v5574_v1, 1  ;;  %v1724_v14 = vadd.f32 %v5424_v34, %v1280_v15  ;;  %v2386_v57 = vrot.slane %v2223_v46, 1 }
 0x2d1   :  { %v1786_v23 = vrot.slane %v1785_v21, 1  ;;  %v1793_v13 = vrot.slane %v1792_v55, 2  ;;  %v1800_v7 = vrot.slane %v1799_v59, 4  ;;  %v3062_v36 = vsel %vm3025_vm9, %v1778_v43, %v3061_v16 }
 0x2d2   :  { %v1807_v19 = vsel %vm1743_vm14, %v1725_v28, -inf  ;;  %v1806_v5 = vsel %vm676_vm6, %v1724_v14, -inf  ;;  %v4114_v9 = vpop.f32.mrb[42].mxu1  ;;  %v5588_v27 = vpop.f32.mrb[80].mxu0  ;;  %v5593_v2 = vsel %vm1629_vm3, %v2386_v57, %v2387_v58 }
 0x2d3   :  { %v1787_v8 = vmax.f32 %v1785_v21, %v1786_v23  ;;  %v1794_v34 = vmax.f32 %v1792_v55, %v1793_v13  ;;  %v1801_v37 = vmax.f32 %v1799_v59, %v1800_v7  ;;  %v1808_v42 = vmax.f32 %v1806_v5, %v1807_v19  ;;  %v1290_v39 = vpop.f32.mrb[43].mxu1  ;;  %v2233_v18 = vpop.f32.mrb[81].mxu0 }
 0x2d4   :  { %v1727_v16 = vadd.f32 %v4114_v9, %v1655_v40  ;;  %v2390_v17 = vrot.slane %v5588_v27, 1  ;;  %v1726_v43 = vadd.f32 %v5437_v53, %v1290_v39  ;;  %v2389_v15 = vrot.slane %v2233_v18, 1 }
 0x2d5   :  { %v1795_v46 = vrot.slane %v1794_v34, 1  ;;  %v1802_v28 = vrot.slane %v1801_v37, 2  ;;  %v1809_v14 = vrot.slane %v1808_v42, 4  ;;  %v3063_v57 = vsel %vm3027_vm10, %v1787_v8, %v3062_v36 }
 0x2d6   :  { %v1816_v21 = vsel %vm1743_vm14, %v1727_v16, -inf  ;;  %v1815_v55 = vsel %vm676_vm6, %v1726_v43, -inf  ;;  %v4117_v59 = vpop.f32.mrb[44].mxu1  ;;  %v5602_v23 = vpop.f32.mrb[82].mxu0  ;;  %v5607_v33 = vsel %vm1629_vm3, %v2389_v15, %v2390_v17 }
 0x2d7   :  { %v1796_v40 = vmax.f32 %v1794_v34, %v1795_v46  ;;  %v1803_v53 = vmax.f32 %v1801_v37, %v1802_v28  ;;  %v1810_v13 = vmax.f32 %v1808_v42, %v1809_v14  ;;  %v1817_v7 = vmax.f32 %v1815_v55, %v1816_v21  ;;  %v1300_v19 = vpop.f32.mrb[45].mxu1  ;;  %v2243_v5 = vpop.f32.mrb[83].mxu0 }
 0x2d8   :  { %v1729_v36 = vadd.f32 %v4117_v59, %v1658_v61  ;;  %v2393_v9 = vrot.slane %v5602_v23, 1  ;;  %v1728_v8 = vadd.f32 %v5447_v12, %v1300_v19  ;;  %v2392_v39 = vrot.slane %v2243_v5, 1 }
 0x2d9   :  { %v1804_v18 = vrot.slane %v1803_v53, 1  ;;  %v1811_v16 = vrot.slane %v1810_v13, 2  ;;  %v1818_v43 = vrot.slane %v1817_v7, 4  ;;  %v3064_v15 = vsel %vm3029_vm11, %v1796_v40, %v3063_v57 }
 0x2da   :  { %v1825_v34 = vsel %vm1743_vm14, %v1729_v36, -inf  ;;  %v1824_v37 = vsel %vm676_vm6, %v1728_v8, -inf  ;;  %v4120_v42 = vpop.f32.mrb[46].mxu1  ;;  %v5616_v46 = vpop.f32.mrb[84].mxu0  ;;  %v5621_v22 = vsel %vm1629_vm3, %v2392_v39, %v2393_v9 }
 0x2db   :  { %v1812_v61 = vmax.f32 %v1810_v13, %v1811_v16  ;;  %v1819_v12 = vmax.f32 %v1817_v7, %v1818_v43  ;;  %v1826_v28 = vmax.f32 %v1824_v37, %v1825_v34  ;;  %v1731_v14 = vadd.f32 %v4120_v42, %v1661_v35  ;;  %v1310_v21 = vpop.f32.mrb[47].mxu1  ;;  %v2253_v57 = vpop.f32.mrb[85].mxu0 }
 0x2dc   :  { %v2396_v55 = vrot.slane %v5616_v46, 1  ;;  %v1730_v59 = vadd.f32 %v5458_v50, %v1310_v21  ;;  %v2395_v40 = vrot.slane %v2253_v57, 1  ;;  %v1805_v19 = vmax.f32 %v1803_v53, %v1804_v18 }
 0x2dd   :  { %v1820_v5 = vrot.slane %v1819_v12, 2  ;;  %v1827_v36 = vrot.slane %v1826_v28, 4  ;;  %v1834_v8 = vsel %vm1743_vm14, %v1731_v14, -inf  ;;  %v1813_v39 = vrot.slane %v1812_v61, 1 }
 0x2de   :  { %v1833_v13 = vsel %vm676_vm6, %v1730_v59, -inf  ;;  %v4123_v7 = vpop.f32.mrb[48].mxu1  ;;  %v5629_v16 = vpop.f32.mrb[86].mxu0  ;;  %v3065_v10 = vsel %vm3031_vm12, %v1805_v19, %v3064_v15  ;;  %v5635_v35 = vsel %vm1629_vm3, %v2395_v40, %v2396_v55 }
 0x2df   :  { %v1821_v50 = vmax.f32 %v1819_v12, %v1820_v5  ;;  %v1828_v43 = vmax.f32 %v1826_v28, %v1827_v36  ;;  %v1835_v53 = vmax.f32 %v1833_v13, %v1834_v8  ;;  %v1733_v18 = vadd.f32 %v4123_v7, %v1664_v60  ;;  %v1320_v34 = vpop.f32.mrb[49].mxu1  ;;  %v2263_v37 = vpop.f32.mrb[87].mxu0 }
 0x2e0   :  { %v2399_v42 = vrot.slane %v5629_v16, 1  ;;  %v1732_v14 = vadd.f32 %v5469_v25, %v1320_v34  ;;  %v2398_v21 = vrot.slane %v2263_v37, 1  ;;  %v1814_v57 = vmax.f32 %v1812_v61, %v1813_v39 }
 0x2e1   :  { %v1829_v15 = vrot.slane %v1828_v43, 2  ;;  %v1836_v59 = vrot.slane %v1835_v53, 4  ;;  %v1843_v19 = vsel %vm1743_vm14, %v1733_v18, -inf  ;;  %v1822_v40 = vrot.slane %v1821_v50, 1 }
 0x2e2   :  { %v1842_v12 = vsel %vm676_vm6, %v1732_v14, -inf  ;;  %v4126_v28 = vpop.f32.mrb[50].mxu1  ;;  %v3066_v5 = vsel %vm3033_vm13, %v1814_v57, %v3065_v10  ;;  %v5644_v49 = vpop.f32.mrb[88].mxu0  ;;  %v5649_v60 = vsel %vm1629_vm3, %v2398_v21, %v2399_v42 }
 0x2e3   :  { %v1830_v25 = vmax.f32 %v1828_v43, %v1829_v15  ;;  %v1837_v36 = vmax.f32 %v1835_v53, %v1836_v59  ;;  %v1844_v61 = vmax.f32 %v1842_v12, %v1843_v19  ;;  %3074 = vrot.lane.b32.xlu0 %v3066_v5, %s4600_s2  ;;  %v1330_v8 = vpop.f32.mrb[51].mxu1  ;;  %v2273_v39 = vpop.f32.mrb[89].mxu0  ;;  %v1735_v13 = vadd.f32 %v4126_v28, %v1667_v38 }
 0x2e4   :  { %v2402_v7 = vrot.slane %v5644_v49, 1  ;;  %v1734_v10 = vadd.f32 %v5480_v51, %v1330_v8  ;;  %v2401_v18 = vrot.slane %v2273_v39, 1  ;;  %v1823_v21 = vmax.f32 %v1821_v50, %v1822_v40 }
 0x2e5   :  { %v1831_v34 = vrot.slane %v1830_v25, 1  ;;  %v1838_v37 = vrot.slane %v1837_v36, 2  ;;  %v1845_v14 = vrot.slane %v1844_v61, 4  ;;  %v1852_v43 = vsel %vm1743_vm14, %v1735_v13, -inf }
 0x2e6   :  { %v1851_v53 = vsel %vm676_vm6, %v1734_v10, -inf  ;;  %v4129_v57 = vpop.f32.mrb[52].mxu1  ;;  %v5658_v15 = vpop.f32.mrb[90].mxu0  ;;  %v5663_v26 = vsel %vm1629_vm3, %v2401_v18, %v2402_v7 }
 0x2e7   :  { %v1832_v38 = vmax.f32 %v1830_v25, %v1831_v34  ;;  %v1839_v59 = vmax.f32 %v1837_v36, %v1838_v37  ;;  %v1846_v51 = vmax.f32 %v1844_v61, %v1845_v14  ;;  %v1853_v19 = vmax.f32 %v1851_v53, %v1852_v43  ;;  %v1340_v12 = vpop.f32.mrb[53].mxu1  ;;  %v2283_v28 = vpop.f32.mrb[91].mxu0 }
 0x2e8   :  { %v1737_v50 = vadd.f32 %v4129_v57, %v1670_v24  ;;  %v6056_v40 = vrot.slane %v5658_v15, 1  ;;  %v1736_v5 = vadd.f32 %v5494_v52, %v1340_v12  ;;  %v2404_v8 = vrot.slane %v2283_v28, 1 }
 0x2e9   :  { %v3067_v39 = vsel %vm3021_vm7, %v1832_v38, %v1823_v21  ;;  %v1840_v13 = vrot.slane %v1839_v59, 1  ;;  %v1847_v10 = vrot.slane %v1846_v51, 2  ;;  %v1854_v18 = vrot.slane %v1853_v19, 4 }
 0x2ea   :  { %v1861_v25 = vsel %vm1743_vm14, %v1737_v50, -inf  ;;  %v1860_v36 = vsel %vm676_vm6, %v1736_v5, -inf  ;;  %v4132_v61 = vpop.f32.mrb[54].mxu1  ;;  %v5672_v34 = vpop.f32.mrb[92].mxu0  ;;  %v5677_v56 = vsel %vm1629_vm3, %v2404_v8, %v6056_v40 }
 0x2eb   :  { %v1841_v24 = vmax.f32 %v1839_v59, %v1840_v13  ;;  %v1848_v52 = vmax.f32 %v1846_v51, %v1847_v10  ;;  %v1855_v37 = vmax.f32 %v1853_v19, %v1854_v18  ;;  %v1862_v14 = vmax.f32 %v1860_v36, %v1861_v25  ;;  %v1350_v21 = vpop.f32.mrb[55].mxu1  ;;  %v2293_v43 = vpop.f32.mrb[93].mxu0 }
 0x2ec   :  { %v1739_v53 = vadd.f32 %v4132_v61, %v1673_v45  ;;  %v2408_v57 = vrot.slane %v5672_v34, 1  ;;  %v1738_v38 = vadd.f32 %v5507_v0, %v1350_v21  ;;  %v2407_v12 = vrot.slane %v2293_v43, 1 }
 0x2ed   :  { %v1849_v28 = vrot.slane %v1848_v52, 1  ;;  %v1856_v50 = vrot.slane %v1855_v37, 2  ;;  %v1863_v5 = vrot.slane %v1862_v14, 4  ;;  %v3068_v8 = vsel %vm3023_vm8, %v1841_v24, %v3067_v39 }
 0x2ee   :  { %v1870_v59 = vsel %vm1743_vm14, %v1739_v53, -inf  ;;  %v1869_v51 = vsel %vm676_vm6, %v1738_v38, -inf  ;;  %v4135_v19 = vpop.f32.mrb[56].mxu1  ;;  %v5686_v13 = vpop.f32.mrb[94].mxu0  ;;  %v5691_v41 = vsel %vm1629_vm3, %v2407_v12, %v2408_v57  ;;  %v6057_v39 = vrot.slane %v5502_v6, 1 }
 0x2ef   :  { %v1850_v45 = vmax.f32 %v1848_v52, %v1849_v28  ;;  %v1857_v0 = vmax.f32 %v1855_v37, %v1856_v50  ;;  %v1864_v10 = vmax.f32 %v1862_v14, %v1863_v5  ;;  %v1871_v18 = vmax.f32 %v1869_v51, %v1870_v59  ;;  %v1360_v25 = vpop.f32.mrb[57].mxu1  ;;  %v2303_v36 = vpop.f32.mrb[95].mxu0 }
 0x2f0   :  { %v1741_v61 = vadd.f32 %v4135_v19, %v6057_v39  ;;  %v2411_v24 = vrot.slane %v5686_v13, 1  ;;  %v1740_v21 = vadd.f32 %v5522_v30, %v1360_v25  ;;  %v2410_v43 = vrot.slane %v2303_v36, 1 }
 0x2f1   :  { %v1858_v53 = vrot.slane %v1857_v0, 1  ;;  %v1865_v38 = vrot.slane %v1864_v10, 2  ;;  %v1872_v40 = vrot.slane %v1871_v18, 4  ;;  %v3069_v12 = vsel %vm3025_vm9, %v1850_v45, %v3068_v8 }
 0x2f2   :  { %v1879_v52 = vsel %vm1743_vm14, %v1741_v61, -inf  ;;  %v1878_v37 = vsel %vm676_vm6, %v1740_v21, -inf  ;;  %v4194_v14 = vpop.f32.mrb[58].mxu1  ;;  %v5700_v28 = vpop.f32.mrb[96].mxu0  ;;  %v5705_v6 = vsel %vm1629_vm3, %v2410_v43, %v2411_v24  ;;  %v6058_v8 = vrot.slane %v5517_v3, 1 }
 0x2f3   :  { %v1859_v50 = vmax.f32 %v1857_v0, %v1858_v53  ;;  %v1866_v30 = vmax.f32 %v1864_v10, %v1865_v38  ;;  %v1873_v5 = vmax.f32 %v1871_v18, %v1872_v40  ;;  %v1880_v59 = vmax.f32 %v1878_v37, %v1879_v52  ;;  %v1955_v51 = vpop.f32.mrb[59].mxu1  ;;  %v2313_v19 = vpop.f32.mrb[97].mxu0 }
 0x2f4   :  { %v5709_v45 = vadd.f32 %v4194_v14, %v6058_v8  ;;  %v2414_v25 = vrot.slane %v5700_v28, 1  ;;  %v5713_v36 = vadd.f32 %v5538_v54, %v1955_v51  ;;  %v2413_v39 = vrot.slane %v2313_v19, 1 }
 0x2f5   :  { %v1867_v61 = vrot.slane %v1866_v30, 1  ;;  %v1874_v21 = vrot.slane %v1873_v5, 2  ;;  %v1881_v43 = vrot.slane %v1880_v59, 4  ;;  %v3070_v0 = vsel %vm3027_vm10, %v1859_v50, %v3069_v12 }
 0x2f6   :  { %v4197_v10 = vpop.f32.mrb[60].mxu1  ;;  %v5716_v40 = vpop.f32.mrb[98].mxu0  ;;  %v5721_v3 = vsel %vm1629_vm3, %v2413_v39, %v2414_v25 }
 0x2f7   :  { %v1868_v18 = vmax.f32 %v1866_v30, %v1867_v61  ;;  %v1875_v53 = vmax.f32 %v1873_v5, %v1874_v21  ;;  %v1882_v38 = vmax.f32 %v1880_v59, %v1881_v43  ;;  %v5725_v54 = vadd.f32 %v4197_v10, %v2378_v20  ;;  %v1965_v52 = vpop.f32.mrb[61].mxu1  ;;  %v2323_v37 = vpop.f32.mrb[99].mxu0 }
 0x2f8   :  { %v2417_v14 = vrot.slane %v5716_v40, 1  ;;  %v5729_v12 = vadd.f32 %v5551_v62, %v1965_v52  ;;  %v2416_v50 = vrot.slane %v2323_v37, 1 }
 0x2f9   :  { %v1876_v51 = vrot.slane %v1875_v53, 1  ;;  %v1883_v19 = vrot.slane %v1882_v38, 2  ;;  %v3071_v8 = vsel %vm3029_vm11, %v1868_v18, %v3070_v0 }
 0x2fa   :  { %v4200_v39 = vpop.f32.mrb[62].mxu1  ;;  %v5732_v30 = vpop.f32.mrb[100].mxu0  ;;  %v5737_v47 = vsel %vm1629_vm3, %v2416_v50, %v2417_v14 }
 0x2fb   :  { %v1884_v20 = vmax.f32 %v1882_v38, %v1883_v19  ;;  %v5741_v5 = vadd.f32 %v4200_v39, %v2381_v11  ;;  %v2420_v62 = vrot.slane %v5732_v30, 1  ;;  %v1975_v59 = vpop.f32.mrb[63].mxu1  ;;  %v2333_v61 = vpop.f32.mrb[101].mxu0  ;;  %v1877_v21 = vmax.f32 %v1875_v53, %v1876_v51 }
 0x2fc   :  { %v5745_v43 = vadd.f32 %v5565_v29, %v1975_v59  ;;  %v2419_v0 = vrot.slane %v2333_v61, 1 }
 0x2fd   :  { %v1885_v10 = vrot.slane %v1884_v20, 1  ;;  %v3072_v18 = vsel %vm3031_vm12, %v1877_v21, %v3071_v8 }
 0x2fe   :  { %v4203_v52 = vpop.f32.mrb[64].mxu1  ;;  %v5751_v38 = vsel %vm1629_vm3, %v2419_v0, %v2420_v62 }
 0x2ff   :  { %v5755_v32 = vadd.f32 %v4203_v52, %v2384_v4  ;;  %v1985_v11 = vpop.f32.mrb[65].mxu1  ;;  %v1886_v37 = vmax.f32 %v1884_v20, %v1885_v10  ;;  %v3132_v4 = vld [vmem:[%s6048_s7 + $0x8] sm:$0xff] }
 0x300   :  { %v5758_v53 = vadd.f32 %v5579_v48, %v1985_v11  ;;  %v3133_v48 = vld [vmem:[%s6048_s7 + $0x10] sm:$0xff]  ;;  %v4435_v1 = vpack.c.bf16 %v3132_v4, %v3131_v63 }
 0x301   :  { %v3073_v29 = vsel %vm3033_vm13, %v1886_v37, %v3072_v18 }
 0x302   :  { %v4206_v50 = vpop.f32.mrb[66].mxu1  ;;  %3076 = vrot.lane.b32.xlu1 %v3073_v29, %s4600_s2  ;;  %4436 = vmatprep.subr.bf16.mxu0 %v4435_v1 }
 0x303   :  { %v5764_v51 = vadd.f32 %v4206_v50, %v2387_v58  ;;  %v1995_v19 = vpop.f32.mrb[67].mxu1  ;;  %v3134_v58 = vld [vmem:[%s6048_s7 + $0x18] sm:$0xff]  ;;  %4438 = vmatpush3.bf16.msra.mxu0 %v4435_v1  ;;  %v6059_v50 = vrot.slane %v5658_v15, 1 }
 0x304   :  { %v5767_v8 = vadd.f32 %v5593_v2, %v1995_v19  ;;  %v4439_v59 = vpack.c.bf16 %v3134_v58, %v3133_v48 }
 0x306   :  { %v4209_v39 = vpop.f32.mrb[68].mxu1  ;;  %4440 = vmatprep.subr.bf16.mxu0 %v4439_v59 }
 0x307   :  { %v5783_v2 = vadd.f32 %v4209_v39, %v2390_v17  ;;  %v2005_v20 = vpop.f32.mrb[69].mxu1  ;;  %4442 = vmatpush3.bf16.msra.mxu0 %v4439_v59 }
 0x308   :  { %v5786_v61 = vadd.f32 %v5607_v33, %v2005_v20 }
 0x30a   :  { %v4212_v21 = vpop.f32.mrb[70].mxu1 }
 0x30b   :  { %v5790_v0 = vadd.f32 %v4212_v21, %v2393_v9  ;;  %v2015_v10 = vpop.f32.mrb[71].mxu1 }
 0x30c   :  { %v5793_v18 = vadd.f32 %v5621_v22, %v2015_v10 }
 0x30e   :  { %v4215_v27 = vpop.f32.mrb[72].mxu1 }
 0x30f   :  { %v5797_v17 = vadd.f32 %v4215_v27, %v2396_v55  ;;  %v2025_v33 = vpop.f32.mrb[73].mxu1 }
 0x310   :  { %v5800_v52 = vadd.f32 %v5635_v35, %v2025_v33 }
 0x312   :  { %v4218_v11 = vpop.f32.mrb[74].mxu1 }
 0x313   :  { %v5804_v23 = vadd.f32 %v4218_v11, %v2399_v42  ;;  %v2035_v9 = vpop.f32.mrb[75].mxu1 }
 0x314   :  { %v5807_v37 = vadd.f32 %v5649_v60, %v2035_v9 }
 0x316   :  { %v4221_v22 = vpop.f32.mrb[76].mxu1 }
 0x317   :  { %v5811_v29 = vadd.f32 %v4221_v22, %v2402_v7  ;;  %v2045_v46 = vpop.f32.mrb[77].mxu1 }
 0x318   :  { %v5814_v55 = vadd.f32 %v5663_v26, %v2045_v46 }
 0x31a   :  { %v4224_v35 = vpop.f32.mrb[78].mxu1 }
 0x31b   :  { %v5818_v19 = vadd.f32 %v4224_v35, %v6059_v50  ;;  %v2055_v16 = vpop.f32.mrb[79].mxu1 }
 0x31c   :  { %v5821_v42 = vadd.f32 %v5677_v56, %v2055_v16 }
 0x31e   :  { %v4227_v60 = vpop.f32.mrb[80].mxu1 }
 0x31f   :  { %v5825_v63 = vadd.f32 %v4227_v60, %v2408_v57  ;;  %v2065_v49 = vpop.f32.mrb[81].mxu1 }
 0x320   :  { %v5828_v7 = vadd.f32 %v5691_v41, %v2065_v49 }
 0x322   :  { %v4230_v26 = vpop.f32.mrb[82].mxu1 }
 0x323   :  { %v5832_v4 = vadd.f32 %v4230_v26, %v2411_v24  ;;  %v2075_v15 = vpop.f32.mrb[83].mxu1 }
 0x324   :  { %v5835_v48 = vadd.f32 %v5705_v6, %v2075_v15 }
 0x326   :  { %v4233_v56 = vpop.f32.mrb[84].mxu1 }
 0x327   :  { %v5839_v39 = vadd.f32 %v4233_v56, %v2414_v25  ;;  %v2085_v34 = vpop.f32.mrb[85].mxu1 }
 0x328   :  { %v5842_v57 = vadd.f32 %v5721_v3, %v2085_v34 }
 0x32a   :  { %v4236_v41 = vpop.f32.mrb[86].mxu1 }
 0x32b   :  { %v5846_v1 = vadd.f32 %v4236_v41, %v2417_v14  ;;  %v2095_v13 = vpop.f32.mrb[87].mxu1 }
 0x32c   :  { %v5849_v24 = vadd.f32 %v5737_v47, %v2095_v13 }
 0x32e   :  { %v4239_v6 = vpop.f32.mrb[88].mxu1 }
 0x32f   :  { %v5853_v58 = vadd.f32 %v4239_v6, %v2420_v62  ;;  %v2105_v28 = vpop.f32.mrb[89].mxu1 }
 0x330   :  { %v5856_v25 = vadd.f32 %v5751_v38, %v2105_v28 }
 0x332   :  { %v4298_v3 = vpop.f32.mrb[90].mxu1 }
 0x333   :  { %v2748_v20 = vrot.slane %v4298_v3, 2  ;;  %v2555_v59 = vpop.f32.mrb[91].mxu1 }
 0x334   :  { %v2747_v40 = vrot.slane %v2555_v59, 2 }
 0x335   :  { %v2828_v14 = vadd.f32 %v2748_v20, %v5709_v45 }
 0x336   :  { %v2749_v47 = vsel %vm2746_vm15, %v2747_v40, %v2748_v20  ;;  %v4301_v21 = vpop.f32.mrb[92].mxu1 }
 0x337   :  { %v2827_v30 = vadd.f32 %v2749_v47, %v5713_v36  ;;  %v2751_v62 = vrot.slane %v4301_v21, 2  ;;  %v2565_v10 = vpop.f32.mrb[93].mxu1  ;;  %v2862_v38 = vsel %vm2861_vm0, %v2828_v14, -inf }
 0x338   :  { %v2750_v27 = vrot.slane %v2565_v10, 2 }
 0x339   :  { %v2860_v33 = vsel %vm2859_vm1, %v2827_v30, -inf  ;;  %v2830_v11 = vadd.f32 %v2751_v62, %v5725_v54 }
 0x33a   :  { %v2863_v9 = vmax.f32 %v2860_v33, %v2862_v38  ;;  %v2752_v22 = vsel %vm2746_vm15, %v2750_v27, %v2751_v62  ;;  %v4304_v45 = vpop.f32.mrb[94].mxu1 }
 0x33b   :  { %v2829_v46 = vadd.f32 %v2752_v22, %v5729_v12  ;;  %v2754_v35 = vrot.slane %v4304_v45, 2  ;;  %v2575_v50 = vpop.f32.mrb[95].mxu1  ;;  %v2871_v36 = vsel %vm2861_vm0, %v2830_v11, -inf }
 0x33c   :  { %v2864_v16 = vrot.slane %v2863_v9, 4  ;;  %v2753_v60 = vrot.slane %v2575_v50, 2 }
 0x33d   :  { %v2870_v49 = vsel %vm2859_vm1, %v2829_v46, -inf  ;;  %v2832_v26 = vadd.f32 %v2754_v35, %v5741_v5 }
 0x33e   :  { %v2865_v15 = vmax.f32 %v2863_v9, %v2864_v16  ;;  %v2872_v56 = vmax.f32 %v2870_v49, %v2871_v36  ;;  %v2755_v54 = vsel %vm2746_vm15, %v2753_v60, %v2754_v35  ;;  %v4307_v34 = vpop.f32.mrb[96].mxu1 }
 0x33f   :  { %v2831_v41 = vadd.f32 %v2755_v54, %v5745_v43  ;;  %v2757_v13 = vrot.slane %v4307_v34, 2  ;;  %v2585_v6 = vpop.f32.mrb[97].mxu1  ;;  %v2880_v20 = vsel %vm2861_vm0, %v2832_v26, -inf }
 0x340   :  { %v2866_v12 = vrot.slane %v2865_v15, 2  ;;  %v2873_v28 = vrot.slane %v2872_v56, 4  ;;  %v2756_v3 = vrot.slane %v2585_v6, 2 }
 0x341   :  { %v2879_v59 = vsel %vm2859_vm1, %v2831_v41, -inf  ;;  %v2834_v40 = vadd.f32 %v2757_v13, %v5755_v32 }
 0x342   :  { %v2874_v14 = vmax.f32 %v2872_v56, %v2873_v28  ;;  %v2881_v5 = vmax.f32 %v2879_v59, %v2880_v20  ;;  %v2758_v47 = vsel %vm2746_vm15, %v2756_v3, %v2757_v13  ;;  %v4310_v21 = vpop.f32.mrb[98].mxu1  ;;  %v2867_v30 = vmax.f32 %v2865_v15, %v2866_v12 }
 0x343   :  { %v2833_v62 = vadd.f32 %v2758_v47, %v5758_v53  ;;  %v2760_v43 = vrot.slane %v4310_v21, 2  ;;  %v2595_v10 = vpop.f32.mrb[99].mxu1  ;;  %v2889_v11 = vsel %vm2861_vm0, %v2834_v40, -inf }
 0x344   :  { %v2875_v27 = vrot.slane %v2874_v14, 2  ;;  %v2882_v38 = vrot.slane %v2881_v5, 4  ;;  %v2759_v33 = vrot.slane %v2595_v10, 2  ;;  %v2868_v50 = vrot.slane %v2867_v30, 1 }
 0x345   :  { %v2888_v9 = vsel %vm2859_vm1, %v2833_v62, -inf  ;;  %v2836_v22 = vadd.f32 %v2760_v43, %v5764_v51 }
 0x346   :  { %v2876_v32 = vmax.f32 %v2874_v14, %v2875_v27  ;;  %v2883_v45 = vmax.f32 %v2881_v5, %v2882_v38  ;;  %v2890_v46 = vmax.f32 %v2888_v9, %v2889_v11  ;;  %v4313_v35 = vpop.f32.mrb[100].mxu1  ;;  %v2761_v16 = vsel %vm2746_vm15, %v2759_v33, %v2760_v43 }
 0x347   :  { %v2763_v60 = vrot.slane %v4313_v35, 2  ;;  %v2605_v53 = vpop.f32.mrb[101].mxu1  ;;  %v2835_v15 = vadd.f32 %v2761_v16, %v5767_v8  ;;  %v2898_v56 = vsel %vm2861_vm0, %v2836_v22, -inf  ;;  %v2869_v28 = vmax.f32 %v2867_v30, %v2868_v50 }
 0x348   :  { %v2877_v36 = vrot.slane %v2876_v32, 1  ;;  %v2884_v49 = vrot.slane %v2883_v45, 2  ;;  %v2891_v26 = vrot.slane %v2890_v46, 4  ;;  %v2762_v34 = vrot.slane %v2605_v53, 2 }
 0x349   :  { %v2838_v54 = vadd.f32 %v2763_v60, %v5783_v2  ;;  %v2897_v6 = vsel %vm2859_vm1, %v2835_v15, -inf }
 0x34a   :  { %v2878_v51 = vmax.f32 %v2876_v32, %v2877_v36  ;;  %v2885_v41 = vmax.f32 %v2883_v45, %v2884_v49  ;;  %v2892_v13 = vmax.f32 %v2890_v46, %v2891_v26  ;;  %v4316_v12 = vpop.f32.mrb[102].mxu1  ;;  %v2899_v3 = vmax.f32 %v2897_v6, %v2898_v56 }
 0x34b   :  { %v2764_v20 = vsel %vm2746_vm15, %v2762_v34, %v2763_v60  ;;  %v2766_v59 = vrot.slane %v4316_v12, 2  ;;  %v2615_v40 = vpop.f32.mrb[103].mxu1  ;;  %v2907_v2 = vsel %vm2861_vm0, %v2838_v54, -inf }
 0x34c   :  { %v2886_v14 = vrot.slane %v2885_v41, 1  ;;  %v2893_v5 = vrot.slane %v2892_v13, 2  ;;  %v2837_v8 = vadd.f32 %v2764_v20, %v5786_v61  ;;  %v2765_v47 = vrot.slane %v2615_v40, 2 }
 0x34d   :  { %v2900_v21 = vrot.slane %v2899_v3, 4  ;;  %v2840_v62 = vadd.f32 %v2766_v59, %v5790_v0  ;;  %v3096_v43 = vsel %vm3021_vm7, %v2878_v51, %v2869_v28 }
 0x34e   :  { %v2887_v10 = vmax.f32 %v2885_v41, %v2886_v14  ;;  %v2894_v27 = vmax.f32 %v2892_v13, %v2893_v5  ;;  %v2906_v30 = vsel %vm2859_vm1, %v2837_v8, -inf  ;;  %v2767_v38 = vsel %vm2746_vm15, %v2765_v47, %v2766_v59  ;;  %v4319_v33 = vpop.f32.mrb[104].mxu1 }
 0x34f   :  { %v2901_v11 = vmax.f32 %v2899_v3, %v2900_v21  ;;  %v2908_v9 = vmax.f32 %v2906_v30, %v2907_v2  ;;  %v2839_v22 = vadd.f32 %v2767_v38, %v5793_v18  ;;  %v2625_v61 = vpop.f32.mrb[105].mxu1  ;;  %v2769_v45 = vrot.slane %v4319_v33, 2 }
 0x350   :  { %v2895_v32 = vrot.slane %v2894_v27, 1  ;;  %v2768_v46 = vrot.slane %v2625_v61, 2  ;;  %v3097_v35 = vsel %vm3023_vm8, %v2887_v10, %v3096_v43  ;;  %v2916_v16 = vsel %vm2861_vm0, %v2840_v62, -inf }
 0x351   :  { %v2902_v0 = vrot.slane %v2901_v11, 2  ;;  %v2909_v50 = vrot.slane %v2908_v9, 4  ;;  %v2915_v60 = vsel %vm2859_vm1, %v2839_v22, -inf  ;;  %v2842_v49 = vadd.f32 %v2769_v45, %v5797_v17 }
 0x352   :  { %v2896_v53 = vmax.f32 %v2894_v27, %v2895_v32  ;;  %v2917_v36 = vmax.f32 %v2915_v60, %v2916_v16  ;;  %v2770_v26 = vsel %vm2746_vm15, %v2768_v46, %v2769_v45  ;;  %v4322_v15 = vpop.f32.mrb[106].mxu1 }
 0x353   :  { %v2903_v18 = vmax.f32 %v2901_v11, %v2902_v0  ;;  %v2910_v56 = vmax.f32 %v2908_v9, %v2909_v50  ;;  %v2841_v54 = vadd.f32 %v2770_v26, %v5800_v52  ;;  %v2772_v34 = vrot.slane %v4322_v15, 2  ;;  %v2635_v51 = vpop.f32.mrb[107].mxu1 }
 0x354   :  { %v2918_v41 = vrot.slane %v2917_v36, 4  ;;  %v2925_v13 = vsel %vm2861_vm0, %v2842_v49, -inf  ;;  %v2771_v6 = vrot.slane %v2635_v51, 2  ;;  %v3098_v12 = vsel %vm3025_vm9, %v2896_v53, %v3097_v35  ;;  %v3136_v53 = vld [vmem:[%s6048_s7 + $0x28] sm:$0xff] }
 0x355   :  { %v2911_v28 = vrot.slane %v2910_v56, 2  ;;  %v2924_v3 = vsel %vm2859_vm1, %v2841_v54, -inf  ;;  %v2844_v17 = vadd.f32 %v2772_v34, %v5804_v23  ;;  %v2904_v20 = vrot.slane %v2903_v18, 1 }
 0x356   :  { %v2919_v59 = vmax.f32 %v2917_v36, %v2918_v41  ;;  %v2926_v40 = vmax.f32 %v2924_v3, %v2925_v13  ;;  %v2773_v14 = vsel %vm2746_vm15, %v2771_v6, %v2772_v34  ;;  %v4325_v5 = vpop.f32.mrb[108].mxu1 }
 0x357   :  { %v2843_v52 = vadd.f32 %v2773_v14, %v5807_v37  ;;  %v2775_v8 = vrot.slane %v4325_v5, 2  ;;  %v2645_v47 = vpop.f32.mrb[109].mxu1  ;;  %v2905_v21 = vmax.f32 %v2903_v18, %v2904_v20  ;;  %v2912_v43 = vmax.f32 %v2910_v56, %v2911_v28 }
 0x358   :  { %v2927_v2 = vrot.slane %v2926_v40, 4  ;;  %v2774_v62 = vrot.slane %v2645_v47, 2  ;;  %v2920_v10 = vrot.slane %v2919_v59, 2  ;;  %v2934_v27 = vsel %vm2861_vm0, %v2844_v17, -inf }
 0x359   :  { %v2933_v30 = vsel %vm2859_vm1, %v2843_v52, -inf  ;;  %v2846_v23 = vadd.f32 %v2775_v8, %v5811_v29  ;;  %v3099_v38 = vsel %vm3027_vm10, %v2905_v21, %v3098_v12  ;;  %v2913_v37 = vrot.slane %v2912_v43, 1  ;;  %v3135_v29 = vld [vmem:[%s6048_s7 + $0x20] sm:$0xff] }
 0x35a   :  { %v2935_v33 = vmax.f32 %v2933_v30, %v2934_v27  ;;  %v2776_v11 = vsel %vm2746_vm15, %v2774_v62, %v2775_v8  ;;  %v4328_v9 = vpop.f32.mrb[110].mxu1  ;;  %v2921_v22 = vmax.f32 %v2919_v59, %v2920_v10  ;;  %v2928_v35 = vmax.f32 %v2926_v40, %v2927_v2 }
 0x35b   :  { %v2943_v61 = vsel %vm2861_vm0, %v2846_v23, -inf  ;;  %v2845_v32 = vadd.f32 %v2776_v11, %v5814_v55  ;;  %v2778_v45 = vrot.slane %v4328_v9, 2  ;;  %v2655_v46 = vpop.f32.mrb[111].mxu1  ;;  %v2914_v16 = vmax.f32 %v2912_v43, %v2913_v37  ;;  %v3138_v23 = vld [vmem:[%s6048_s7 + $0x38] sm:$0xff] }
 0x35c   :  { %v2936_v0 = vrot.slane %v2935_v33, 4  ;;  %v2777_v50 = vrot.slane %v2655_v46, 2  ;;  %v2922_v60 = vrot.slane %v2921_v22, 1  ;;  %v2929_v55 = vrot.slane %v2928_v35, 2 }
 0x35d   :  { %v2942_v36 = vsel %vm2859_vm1, %v2845_v32, -inf  ;;  %v2848_v49 = vadd.f32 %v2778_v45, %v5818_v19  ;;  %v4443_v26 = vpack.c.bf16 %v3136_v53, %v3135_v29  ;;  %v3100_v19 = vsel %vm3029_vm11, %v2914_v16, %v3099_v38 }
 0x35e   :  { %v2937_v15 = vmax.f32 %v2935_v33, %v2936_v0  ;;  %v2944_v18 = vmax.f32 %v2942_v36, %v2943_v61  ;;  %v2779_v56 = vsel %vm2746_vm15, %v2777_v50, %v2778_v45  ;;  %v4331_v54 = vpop.f32.mrb[112].mxu1  ;;  %v2923_v34 = vmax.f32 %v2921_v22, %v2922_v60 }
 0x35f   :  { %v2952_v51 = vsel %vm2861_vm0, %v2848_v49, -inf  ;;  %v2847_v41 = vadd.f32 %v2779_v56, %v5821_v42  ;;  %v2781_v13 = vrot.slane %v4331_v54, 2  ;;  %v2665_v6 = vpop.f32.mrb[113].mxu1  ;;  %v2930_v12 = vmax.f32 %v2928_v35, %v2929_v55  ;;  %4444 = vmatprep.subr.bf16.mxu0 %v4443_v26 }
 0x360   :  { %v2938_v28 = vrot.slane %v2937_v15, 2  ;;  %v2945_v3 = vrot.slane %v2944_v18, 4  ;;  %v2780_v17 = vrot.slane %v2665_v6, 2  ;;  %4446 = vmatpush3.bf16.msra.mxu0 %v4443_v26  ;;  %v3101_v14 = vsel %vm3031_vm12, %v2923_v34, %v3100_v19 }
 0x361   :  { %v2951_v20 = vsel %vm2859_vm1, %v2847_v41, -inf  ;;  %v2850_v59 = vadd.f32 %v2781_v13, %v5825_v63  ;;  %v2931_v40 = vrot.slane %v2930_v12, 1  ;;  %v3137_v63 = vld [vmem:[%s6048_s7 + $0x30] sm:$0xff] }
 0x362   :  { %v2946_v5 = vmax.f32 %v2944_v18, %v2945_v3  ;;  %v2953_v52 = vmax.f32 %v2951_v20, %v2952_v51  ;;  %v2782_v42 = vsel %vm2746_vm15, %v2780_v17, %v2781_v13  ;;  %v4334_v8 = vpop.f32.mrb[114].mxu1  ;;  %v2939_v47 = vmax.f32 %v2937_v15, %v2938_v28 }
 0x363   :  { %v2849_v21 = vadd.f32 %v2782_v42, %v5828_v7  ;;  %v2784_v2 = vrot.slane %v4334_v8, 2  ;;  %v2675_v62 = vpop.f32.mrb[115].mxu1  ;;  %v2932_v43 = vmax.f32 %v2930_v12, %v2931_v40  ;;  %v2961_v38 = vsel %vm2861_vm0, %v2850_v59, -inf }
 0x364   :  { %v2947_v10 = vrot.slane %v2946_v5, 2  ;;  %v2954_v27 = vrot.slane %v2953_v52, 4  ;;  %v2783_v30 = vrot.slane %v2675_v62, 2  ;;  %v2940_v32 = vrot.slane %v2939_v47, 1 }
 0x365   :  { %v2960_v33 = vsel %vm2859_vm1, %v2849_v21, -inf  ;;  %v2852_v7 = vadd.f32 %v2784_v2, %v5832_v4  ;;  %v3102_v11 = vsel %vm3033_vm13, %v2932_v43, %v3101_v14  ;;  %v4447_v0 = vpack.c.bf16 %v3138_v23, %v3137_v63 }
 0x366   :  { %v2948_v9 = vmax.f32 %v2946_v5, %v2947_v10  ;;  %v2955_v37 = vmax.f32 %v2953_v52, %v2954_v27  ;;  %v2962_v22 = vmax.f32 %v2960_v33, %v2961_v38  ;;  %3110 = vrot.lane.b32.xlu0 %v3102_v11, %s4601_s24  ;;  %v4337_v61 = vpop.f32.mrb[116].mxu1  ;;  %v2785_v45 = vsel %vm2746_vm15, %v2783_v30, %v2784_v2 }
 0x367   :  { %v2787_v46 = vrot.slane %v4337_v61, 2  ;;  %v2685_v35 = vpop.f32.mrb[117].mxu1  ;;  %v2851_v4 = vadd.f32 %v2785_v45, %v5835_v48  ;;  %v2970_v29 = vsel %vm2861_vm0, %v2852_v7, -inf  ;;  %4448 = vmatprep.subr.bf16.mxu0 %v4447_v0  ;;  %v2941_v56 = vmax.f32 %v2939_v47, %v2940_v32 }
 0x368   :  { %v2949_v50 = vrot.slane %v2948_v9, 1  ;;  %v2956_v16 = vrot.slane %v2955_v37, 2  ;;  %v2963_v60 = vrot.slane %v2962_v22, 4  ;;  %v2786_v36 = vrot.slane %v2685_v35, 2  ;;  %4450 = vmatpush3.bf16.msra.mxu0 %v4447_v0 }
 0x369   :  { %v2854_v53 = vadd.f32 %v2787_v46, %v5839_v39  ;;  %v2969_v15 = vsel %vm2859_vm1, %v2851_v4, -inf }
 0x36a   :  { %v2950_v49 = vmax.f32 %v2948_v9, %v2949_v50  ;;  %v2957_v55 = vmax.f32 %v2955_v37, %v2956_v16  ;;  %v2964_v26 = vmax.f32 %v2962_v22, %v2963_v60  ;;  %v4340_v18 = vpop.f32.mrb[118].mxu1  ;;  %v2971_v54 = vmax.f32 %v2969_v15, %v2970_v29 }
 0x36b   :  { %v2788_v34 = vsel %vm2746_vm15, %v2786_v36, %v2787_v46  ;;  %v2790_v51 = vrot.slane %v4340_v18, 2  ;;  %v2695_v41 = vpop.f32.mrb[119].mxu1  ;;  %v2979_v28 = vsel %vm2861_vm0, %v2854_v53, -inf }
 0x36c   :  { %v2958_v48 = vrot.slane %v2957_v55, 1  ;;  %v2965_v13 = vrot.slane %v2964_v26, 2  ;;  %v2853_v6 = vadd.f32 %v2788_v34, %v5842_v57  ;;  %v2789_v39 = vrot.slane %v2695_v41, 2  ;;  %v3687_v34 = vld [vmem:[%s6047_s6] ss:$0 sm:$0xff] }
 0x36d   :  { %v2972_v12 = vrot.slane %v2971_v54, 4  ;;  %v2856_v3 = vadd.f32 %v2790_v51, %v5846_v1  ;;  %v3103_v17 = vsel %vm3021_vm7, %v2950_v49, %v2941_v56 }
 0x36e   :  { %v2959_v19 = vmax.f32 %v2957_v55, %v2958_v48  ;;  %v2966_v20 = vmax.f32 %v2964_v26, %v2965_v13  ;;  %v2978_v59 = vsel %vm2859_vm1, %v2853_v6, -inf  ;;  %v2791_v40 = vsel %vm2746_vm15, %v2789_v39, %v2790_v51  ;;  %v4343_v14 = vpop.f32.mrb[120].mxu1 }
 0x36f   :  { %v2973_v5 = vmax.f32 %v2971_v54, %v2972_v12  ;;  %v2980_v52 = vmax.f32 %v2978_v59, %v2979_v28  ;;  %v2855_v42 = vadd.f32 %v2791_v40, %v5849_v24  ;;  %v2705_v57 = vpop.f32.mrb[121].mxu1  ;;  %v2793_v47 = vrot.slane %v4343_v14, 2  ;;  %v3075_v54 = vpop.permute.xlu0 %3074  ;;  %v3270_v40 = vld [vmem:[%s6051_s10] sm:$0xff]  ;;  %v3272_v14 = vld [vmem:[%s6051_s10 + $0x10] sm:$0xff] }
 0x370   :  { %v2967_v8 = vrot.slane %v2966_v20, 1  ;;  %v2792_v21 = vrot.slane %v2705_v57, 2  ;;  %v3104_v2 = vsel %vm3023_vm8, %v2959_v19, %v3103_v17  ;;  %v2988_v43 = vsel %vm2861_vm0, %v2856_v3, -inf  ;;  %v3688_v19 = vld [vmem:[%s6049_s8] ss:$0 sm:$0xff] }
 0x371   :  { %v2974_v1 = vrot.slane %v2973_v5, 2  ;;  %v2981_v62 = vrot.slane %v2980_v52, 4  ;;  %v2987_v10 = vsel %vm2859_vm1, %v2855_v42, -inf  ;;  %v2858_v63 = vadd.f32 %v2793_v47, %v5853_v58  ;;  %v3273_v42 = vld [vmem:[%s6051_s10 + $0x18] sm:$0xff] }
 0x372   :  { %v2968_v27 = vmax.f32 %v2966_v20, %v2967_v8  ;;  %v2989_v30 = vmax.f32 %v2987_v10, %v2988_v43  ;;  %v2794_v23 = vsel %vm2746_vm15, %v2792_v21, %v2793_v47  ;;  %v3116_v51 = vsel %vm676_vm6, %v5430_v44, %v3075_v54  ;;  %v3274_v8 = vld [vmem:[%s6051_s10 + $0x20] sm:$0xff]  ;;  %v3275_v47 = vld [vmem:[%s6051_s10 + $0x28] sm:$0xff]  ;;  %v3277_v43 = vld [vmem:[%s6051_s10 + $0x38] sm:$0xff] }
 0x373   :  { %v2975_v38 = vmax.f32 %v2973_v5, %v2974_v1  ;;  %v2982_v24 = vmax.f32 %v2980_v52, %v2981_v62  ;;  %v2857_v33 = vadd.f32 %v2794_v23, %v5856_v25  ;;  %v2997_v37 = vsel %vm2861_vm0, %v2858_v63, -inf  ;;  %v3276_v62 = vld [vmem:[%s6051_s10 + $0x30] sm:$0xff] }
 0x374   :  { %v2990_v7 = vrot.slane %v2989_v30, 4  ;;  %v3105_v11 = vsel %vm3025_vm9, %v2968_v27, %v3104_v2  ;;  %v3077_v39 = vpop.permute.xlu1 %3076  ;;  %v4455_v57 = vpack.c.bf16 %v3273_v42, %v3272_v14  ;;  %v4459_v1 = vpack.c.bf16 %v3275_v47, %v3274_v8 }
 0x375   :  { %v2983_v9 = vrot.slane %v2982_v24, 2  ;;  %v2996_v22 = vsel %vm2859_vm1, %v2857_v33, -inf  ;;  %v2976_v61 = vrot.slane %v2975_v38, 1  ;;  %v3117_v12 = vsel %vm676_vm6, %v5529_v31, %v3077_v39  ;;  %v3271_v31 = vld [vmem:[%s6051_s10 + $0x8] sm:$0xff] }
 0x376   :  { %v2991_v32 = vmax.f32 %v2989_v30, %v2990_v7  ;;  %v2998_v45 = vmax.f32 %v2996_v22, %v2997_v37  ;;  %v4451_v52 = vpack.c.bf16 %v3271_v31, %v3270_v40  ;;  %v4463_v27 = vpack.c.bf16 %v3277_v43, %v3276_v62  ;;  %v3266_v7 = vld [vmem:[%s6050_s9] sm:$0xff] }
 0x377   :  { %v2977_v46 = vmax.f32 %v2975_v38, %v2976_v61  ;;  %v2984_v35 = vmax.f32 %v2982_v24, %v2983_v9 }
 0x378   :  { %v2999_v58 = vrot.slane %v2998_v45, 4  ;;  %v2992_v0 = vrot.slane %v2991_v32, 2  ;;  %4452 = vmatprep.subr.bf16.mxu0 %v4451_v52 }
 0x379   :  { %v2985_v50 = vrot.slane %v2984_v35, 1  ;;  %v3106_v16 = vsel %vm3027_vm10, %v2977_v46, %v3105_v11  ;;  %v3267_v11 = vld [vmem:[%s6050_s9 + $0x8] sm:$0xff] }
 0x37a   :  { %v2993_v60 = vmax.f32 %v2991_v32, %v2992_v0  ;;  %v3000_v25 = vmax.f32 %v2998_v45, %v2999_v58  ;;  %v4467_v9 = vpack.c.bf16 %v3267_v11, %v3266_v7 }
 0x37b   :  { %v2986_v4 = vmax.f32 %v2984_v35, %v2985_v50 }
 0x37c   :  { %v2994_v29 = vrot.slane %v2993_v60, 1  ;;  %v3001_v53 = vrot.slane %v3000_v25, 2 }
 0x37d   :  { %v3107_v36 = vsel %vm3029_vm11, %v2986_v4, %v3106_v16 }
 0x37e   :  { %v2995_v49 = vmax.f32 %v2993_v60, %v2994_v29  ;;  %v3002_v55 = vmax.f32 %v3000_v25, %v3001_v53  ;;  %v3268_v53 = vld [vmem:[%s6050_s9 + $0x10] sm:$0xff] }
 0x380   :  { %v3003_v26 = vrot.slane %v3002_v55, 1  ;;  %v3108_v15 = vsel %vm3031_vm12, %v2995_v49, %v3107_v36  ;;  %v3269_v36 = vld [vmem:[%s6050_s9 + $0x18] sm:$0xff] }
 0x381   :  { %v4471_v49 = vpack.c.bf16 %v3269_v36, %v3268_v53 }
 0x382   :  { %v3004_v18 = vmax.f32 %v3002_v55, %v3003_v26  ;;  %v3264_v55 = vld [vmem:[%s6042_s1] sm:$0xff] }
 0x384   :  { %v3109_v56 = vsel %vm3033_vm13, %v3004_v18, %v3108_v15  ;;  %v3265_v15 = vld [vmem:[%s6042_s1 + $0x8] sm:$0xff]  ;;  %v3697_v18 = vld [vmem:[%s6052_s11] ss:$0 sm:$0xff] }
 0x385   :  { %3112 = vrot.lane.b32.xlu1 %v3109_v56, %s4601_s24 }
 0x3d8   :  { %v3111_v41 = vpop.permute.xlu0 %3110 }
 0x3d9   :  { %v3118_v48 = vsel %vm2859_vm1, %v3116_v51, %v3111_v41 }
 0x3da   :  { %v3127_v13 = vadd.f32 %v3687_v34, %v3118_v48 }
 0x3dc   :  { %v3129_v6 = vmax.f32 %v3127_v13, 0.0 }
 0x3de   :  { %3242 = vrot.lane.b32.xlu0 %v3129_v6, %s4602_s27  ;;  %4360 = vmatprep.mubr.msk.f32.mxu0 %vm3146_vm2, %v3129_v6 }
 0x3f7   :  { %v3113_v28 = vpop.permute.xlu1 %3112 }
 0x3f8   :  { %v3119_v3 = vsel %vm2859_vm1, %v3117_v12, %v3113_v28 }
 0x3f9   :  { %v3128_v17 = vadd.f32 %v3687_v34, %v3119_v3 }
 0x3fb   :  { %v3130_v44 = vmax.f32 %v3128_v17, 0.0 }
 0x3fd   :  { %3244 = vrot.lane.b32.xlu0 %v3130_v44, %s4602_s27  ;;  %4361 = vmatmul.mubr.msk.f32.vlgmr.msra.gmra.mrb[102].mxu0 %vm3146_vm2, %v3130_v44 }
 0x3fe   :  { %4454 = vmatpush3.bf16.msra.mxu0 %v4451_v52 }
 0x3ff   :  { %4456 = vmatprep.subr.bf16.mxu0 %v4455_v57 }
 0x402   :  { %4458 = vmatpush3.bf16.msra.mxu0 %v4455_v57 }
 0x403   :  { %4460 = vmatprep.subr.bf16.mxu0 %v4459_v1 }
 0x406   :  { %4462 = vmatpush3.bf16.msra.mxu0 %v4459_v1 }
 0x407   :  { %4464 = vmatprep.subr.bf16.mxu0 %v4463_v27 }
 0x40a   :  { %4466 = vmatpush3.bf16.msra.mxu0 %v4463_v27 }
 0x40b   :  { %4468 = vmatprep.subr.bf16.mxu0 %v4467_v9 }
 0x450   :  { %v3243_v32 = vpop.permute.xlu0 %3242 }
 0x46f   :  { %v3245_v50 = vpop.permute.xlu0 %3244 }
 0x4d0   :  { %v4362_v20 = vpop.f32.mrb[102].mxu0 }
 0x4d1   :  { %v3219_v59 = vpop.f32.mrb[103].mxu0  ;;  %v3225_v21 = vadd.f32 %v4362_v20, %v3688_v19 }
 0x4d2   :  { %v3220_v5 = vadd.f32 %v3688_v19, %v3219_v59 }
 0x4d3   :  { %v3229_v10 = vmax.f32 %v3225_v21, 0.0  ;;  %v3692_v63 = vmul.f32 -1.442695, %v3225_v21 }
 0x4d4   :  { %v3228_v2 = vmax.f32 %v3220_v5, 0.0  ;;  %v3691_v30 = vmul.f32 -1.442695, %v3220_v5 }
 0x4d6   :  { %3254 = vrot.lane.b32.xlu1 %v3228_v2, %s4602_s27  ;;  %4490 = vpow2.f32 %v3691_v30 }
 0x4d7   :  { %4492 = vpow2.f32 %v3692_v63 }
 0x4da   :  { %3256 = vrot.lane.b32.xlu1 %v3229_v10, %s4602_s27 }
 0x4e0   :  { %v4491_v23 = vpop.eup %4490 }
 0x4e1   :  { %v3236_v38 = vadd.f32 1.0, %v4491_v23  ;;  %v4493_v24 = vpop.eup %4492 }
 0x4e2   :  { %v3237_v33 = vadd.f32 1.0, %v4493_v24 }
 0x4e3   :  { %4494 = vrcp.f32 %v3236_v38 }
 0x4e4   :  { %4496 = vrcp.f32 %v3237_v33 }
 0x4ed   :  { %v4495_v37 = vpop.eup %4494 }
 0x4ee   :  { %v3250_v22 = vsub.f32 1.0, %v4495_v37  ;;  %v4497_v61 = vpop.eup %4496  ;;  %v3248_v46 = vmul.f32 %v4495_v37, %v3243_v32 }
 0x4ef   :  { %v3251_v0 = vsub.f32 1.0, %v4497_v61  ;;  %v3249_v60 = vmul.f32 %v4497_v61, %v3245_v50 }
 0x548   :  { %v3255_v45 = vpop.permute.xlu1 %3254 }
 0x549   :  { %v3260_v35 = vmul.f32 %v3255_v45, %v3250_v22 }
 0x54b   :  { %v3262_v58 = vadd.f32 %v3260_v35, %v3248_v46 }
 0x54c   :  { %v3257_v16 = vpop.permute.xlu1 %3256 }
 0x54d   :  { %v3261_v25 = vmul.f32 %v3257_v16, %v3251_v0  ;;  %3280 = vrot.lane.b32.xlu0 %v3262_v58, %s4602_s27 }
 0x54f   :  { %v3263_v4 = vadd.f32 %v3261_v25, %v3249_v60 }
 0x551   :  { %3282 = vrot.lane.b32.xlu1 %v3263_v4, %s4602_s27 }
 0x5bf   :  { %v3281_v29 = vpop.permute.xlu0 %3280 }
 0x5c0   :  { %4379 = vmatprep.mubr.msk.f32.mxu0 %vm3146_vm2, %v3281_v29 }
 0x5c3   :  { %v3283_v26 = vpop.permute.xlu1 %3282 }
 0x5c4   :  { %4380 = vmatmul.mubr.msk.f32.vlgmr.msra.gmra.mrb[104].mxu0 %vm3146_vm2, %v3283_v26 }
 0x5c5   :  { %4470 = vmatpush3.bf16.msra.mxu0 %v4467_v9  ;;  %4390 = vmatprep.mubr.msk.f32.mxu0 %vm2859_vm1, %v3264_v55 }
 0x5c6   :  { %4472 = vmatprep.subr.bf16.mxu0 %v4471_v49 }
 0x5c9   :  { %4474 = vmatpush3.bf16.msra.mxu0 %v4471_v49 }
 0x5cc   :  { %4391 = vmatmul.mubr.msk.f32.vlgmr.msra.gmra.mrb[104].mxu0 %vm2859_vm1, %v3265_v15 }
 0x69f   :  { %v4392_v56 = vpop.f32.mrb[104].mxu0 }
 0x6a0   :  { %v3452_v54 = vadd.f32 %v4392_v56, %v3697_v18  ;;  %v3435_v34 = vpop.f32.mrb[105].mxu0 }
 0x6a1   :  { %v3451_v51 = vadd.f32 %v3697_v18, %v3435_v34 }
 0x6a2   :  { %3454 = vst [vmem:[%s6053_s12 + $0x8] sm:$0xff] %v3452_v54 }
 0x6a3   :  { %3453 = vst [vmem:[%s6053_s12] sm:$0xff] %v3451_v51 }
 0x6a4   :  { %3459 = vsyncpa [#allocation3], 1 }
 0x6a5   :  { %3460 = vsyncpa [#allocation5], 1 }
 0x6a6   :  { %3461 = vsyncpa [#allocation8], 1 }

</bundles_post_ra>
